<compile_context>
chip_gen: v7x
topology: tpu7x:2x2x1
jax: 0.10.0
libtpu: 0.0.40
codegen_flags: <defaults>
</compile_context>

<pallas_src>
import functools

import jax
import jax.numpy as jnp
from jax.experimental import pallas as pl
from jax.experimental.pallas import tpu as pltpu


# ----------------------------------------------------------------------------
# Pallas kernel
# ----------------------------------------------------------------------------

def _upsample4x_kernel(x_ref, wt_ref, r_ref, s_ref, b_ref, o_ref, *, cin, cout):
    """Fused ConvTranspose2d(k=4, s=4) tile, written directly in NCHW layout.

    x_ref : (1, Cin, th, tw)          input tile (NCHW block)
    wt_ref: (Cin, Cout, 4*th, 4*tw)   weight pattern tiled to block size (VMEM resident)
    r_ref : (tw, 4*tw)                0/1 lane-expansion matrix  R[w, 4*ww+kw] = (w == ww)
    s_ref : (4*th, th)                0/1 sublane-expansion matrix S[4*hh+kh, h] = (h == hh)
    b_ref : (Cout, 1, 4*tw)           bias rows (VMEM resident)
    o_ref : (1, Cout, 4*th, 4*tw)     output tile (block of the final NCHW tensor)
    """
    s = s_ref[...]                                    # (4*th, th)
    r = r_ref[...]                                    # (tw, 4*tw)

    # Expand each input channel into its 4x-upsampled block layout on the MXU:
    #   xe[ci][4*hh+kh, 4*ww+kw] == x[ci, hh, ww]
    xe = []
    for ci in range(cin):
        xc = x_ref[0, ci]                             # (th, tw)
        xs = jnp.dot(s, xc, preferred_element_type=jnp.float32)   # (4*th, tw)
        xe.append(jnp.dot(xs, r, preferred_element_type=jnp.float32))  # (4*th, 4*tw)

    # Per output channel: weighted sum over Cin plus bias, stored straight into
    # the NCHW output block (no post-kernel transpose needed).
    for co in range(cout):
        acc = xe[0] * wt_ref[0, co] + b_ref[co]       # (4*th, 4*tw)
        for ci in range(1, cin):
            acc = acc + xe[ci] * wt_ref[ci, co]
        o_ref[0, co] = acc


# ----------------------------------------------------------------------------
# Tiling heuristic
# ----------------------------------------------------------------------------

def _choose_tiles(n, h, w, cout):
    """Pick (th, tw) obeying the (8, 128) BlockSpec rule, ~1 MiB output blocks,
    and >= 8 grid steps when the problem size allows."""
    # Lane tile over W: prefer a multiple of 128 dividing W (dense lanes),
    # otherwise take the full width (block == full dim is always legal).
    tw = w
    for cand in (512, 384, 256, 128):
        if w % cand == 0:
            tw = cand
            break
    # Sublane tile over H: multiples of 8 dividing H, else full H.
    th_cands = [t for t in (32, 24, 16, 8) if h % t == 0]
    if not th_cands:
        th_cands = [h]
    # Largest candidate whose f32 output block stays <= ~1 MiB.
    max_block_bytes = 1 << 20
    th = th_cands[-1]
    for t in th_cands:
        if cout * (4 * t) * (4 * tw) * 4 <= max_block_bytes:
            th = t
            break
    # Prefer >= 8 grid steps (keeps both v7x TensorCores / the megacore split
    # busy and the DMA pipeline deep); shrink th if that helps.
    while n * (h // th) * (w // tw) < 8:
        smaller = [t for t in th_cands if t < th]
        if not smaller:
            break
        th = smaller[0]
    return th, tw


# ----------------------------------------------------------------------------
# Forward pass (NCHW in, NCHW out)
# ----------------------------------------------------------------------------

def upsample_block_forward(x, weight, bias):
    """ConvTranspose2d(kernel_size=4, stride=4, padding=0).

    x:      (N, Cin, H, W)      float32
    weight: (Cin, Cout, 4, 4)   PyTorch ConvTranspose2d layout
    bias:   (Cout,)
    returns (N, Cout, 4H, 4W)
    """
    N, Cin, H, W = x.shape
    wc_in, Cout, KH, KW = weight.shape
    assert wc_in == Cin and KH == 4 and KW == 4

    th, tw = _choose_tiles(N, H, W, Cout)

    x = x.astype(jnp.float32)
    # 0/1 expansion matrices (exact block-expansion on the MXU).
    r_mat = jnp.repeat(jnp.eye(tw, dtype=jnp.float32), KW, axis=1)     # (tw, 4*tw)
    s_mat = jnp.repeat(jnp.eye(th, dtype=jnp.float32), KH, axis=0)     # (4*th, th)
    # Weight pattern tiled to the full output block:
    #   w_tile[ci, co, r, l] = weight[ci, co, r % 4, l % 4]
    w_tile = jnp.tile(weight.astype(jnp.float32), (1, 1, th, tw))      # (Cin, Cout, 4*th, 4*tw)
    # Bias as one lane-row per channel (cheap broadcast add inside the kernel).
    bias_b = jnp.broadcast_to(
        bias.astype(jnp.float32).reshape(Cout, 1, 1), (Cout, 1, 4 * tw))

    kernel = functools.partial(_upsample4x_kernel, cin=Cin, cout=Cout)

    out = pl.pallas_call(
        kernel,
        out_shape=jax.ShapeDtypeStruct((N, Cout, 4 * H, 4 * W), jnp.float32),
        grid=(N, H // th, W // tw),
        in_specs=[
            pl.BlockSpec((1, Cin, th, tw), lambda n, i, j: (n, 0, i, j)),
            pl.BlockSpec((Cin, Cout, 4 * th, 4 * tw), lambda n, i, j: (0, 0, 0, 0)),
            pl.BlockSpec((tw, 4 * tw), lambda n, i, j: (0, 0)),
            pl.BlockSpec((4 * th, th), lambda n, i, j: (0, 0)),
            pl.BlockSpec((Cout, 1, 4 * tw), lambda n, i, j: (0, 0, 0)),
        ],
        out_specs=pl.BlockSpec((1, Cout, 4 * th, 4 * tw),
                               lambda n, i, j: (n, 0, i, j)),
        compiler_params=pltpu.CompilerParams(
            dimension_semantics=("parallel", "parallel", "parallel"),
            vmem_limit_bytes=48 * 1024 * 1024),
    )(x, w_tile, r_mat, s_mat, bias_b)
    return out


# ----------------------------------------------------------------------------

if __name__ == "__main__":
    key = jax.random.PRNGKey(0)
    kx, kw, kb = jax.random.split(key, 3)

    # Small shapes consistent with the module: in_channels=4, out_channels=8,
    # batch=2, 16x16 spatial -> 64x64 output.
    N, Cin, H, W = 2, 4, 16, 16
    Cout = 8

    x = jax.random.normal(kx, (N, Cin, H, W), jnp.float32)
    weight = 0.1 * jax.random.normal(kw, (Cin, Cout, 4, 4), jnp.float32)
    bias = 0.1 * jax.random.normal(kb, (Cout,), jnp.float32)

    fwd = jax.jit(upsample_block_forward)
    y = fwd(x, weight, bias)
    jax.block_until_ready(y)
    assert y.shape == (N, Cout, 4 * H, 4 * W)

    # Independent reference (direct transposed-conv formula via einsum).
    ref = jnp.einsum("nchw,cokl->nohkwl", x, weight).reshape(
        N, Cout, 4 * H, 4 * W) + bias[None, :, None, None]
    assert bool(jnp.all(jnp.isfinite(y)))
    assert jnp.allclose(y, ref, atol=1e-4, rtol=1e-4)

    print("KERNEL_OK")
</pallas_src>

<mosaic_0001>
module attributes {stable_mosaic.version = 11 : i64} {
  func.func @_upsample4x_kernel(%arg0: i32, %arg1: i32, %arg2: i32, %arg3: memref<1x4x8x16xf32, #tpu.memory_space<vmem>>, %arg4: memref<4x8x32x64xf32, #tpu.memory_space<vmem>>, %arg5: memref<16x64xf32, #tpu.memory_space<vmem>>, %arg6: memref<32x8xf32, #tpu.memory_space<vmem>>, %arg7: memref<8x1x64xf32, #tpu.memory_space<vmem>>, %arg8: memref<1x8x32x64xf32, #tpu.memory_space<vmem>>) attributes {dimension_semantics = [#tpu.dimension_semantics<parallel>, #tpu.dimension_semantics<parallel>, #tpu.dimension_semantics<parallel>], iteration_bounds = array<i64: 2, 2, 1>, scalar_prefetch = 0 : i64, scratch_operands = 0 : i64, tpu.core_type = #tpu.core_type<tc>, window_params = [{transform_indices = @transform_0, window_bounds = array<i64: 1, 4, 8, 16>}, {pipeline_mode = #tpu.pipeline_mode<synchronous>, transform_indices = @transform_1, window_bounds = array<i64: 4, 8, 32, 64>}, {pipeline_mode = #tpu.pipeline_mode<synchronous>, transform_indices = @transform_2, window_bounds = array<i64: 16, 64>}, {pipeline_mode = #tpu.pipeline_mode<synchronous>, transform_indices = @transform_3, window_bounds = array<i64: 32, 8>}, {pipeline_mode = #tpu.pipeline_mode<synchronous>, transform_indices = @transform_4, window_bounds = array<i64: 8, 1, 64>}, {transform_indices = @transform_5, window_bounds = array<i64: 1, 8, 32, 64>}]} {
    %c0 = arith.constant 0 : index
    %c0_0 = arith.constant 0 : index
    %0 = vector.load %arg6[%c0, %c0_0] : memref<32x8xf32, #tpu.memory_space<vmem>>, vector<32x8xf32>
    %c0_1 = arith.constant 0 : index
    %c0_2 = arith.constant 0 : index
    %1 = vector.load %arg5[%c0_1, %c0_2] : memref<16x64xf32, #tpu.memory_space<vmem>>, vector<16x64xf32>
    %c0_3 = arith.constant 0 : index
    %c0_4 = arith.constant 0 : index
    %c0_5 = arith.constant 0 : index
    %c0_6 = arith.constant 0 : index
    %2 = vector.load %arg3[%c0_3, %c0_4, %c0_5, %c0_6] : memref<1x4x8x16xf32, #tpu.memory_space<vmem>>, vector<1x1x8x16xf32>
    %3 = vector.shape_cast %2 : vector<1x1x8x16xf32> to vector<8x16xf32>
    %cst = arith.constant dense<0.000000e+00> : vector<32x16xf32>
    %4 = tpu.matmul %0, %3, %cst {dimension_numbers = #tpu.dot_dimension_numbers<[1], [0], [0], [1], [0, 0, 1, 1], [], []>} : vector<32x8xf32>, vector<8x16xf32>, vector<32x16xf32> -> vector<32x16xf32>
    %cst_7 = arith.constant dense<0.000000e+00> : vector<32x64xf32>
    %5 = tpu.matmul %4, %1, %cst_7 {dimension_numbers = #tpu.dot_dimension_numbers<[1], [0], [0], [1], [0, 0, 1, 1], [], []>} : vector<32x16xf32>, vector<16x64xf32>, vector<32x64xf32> -> vector<32x64xf32>
    %c0_8 = arith.constant 0 : index
    %c1 = arith.constant 1 : index
    %c0_9 = arith.constant 0 : index
    %c0_10 = arith.constant 0 : index
    %6 = vector.load %arg3[%c0_8, %c1, %c0_9, %c0_10] : memref<1x4x8x16xf32, #tpu.memory_space<vmem>>, vector<1x1x8x16xf32>
    %7 = vector.shape_cast %6 : vector<1x1x8x16xf32> to vector<8x16xf32>
    %cst_11 = arith.constant dense<0.000000e+00> : vector<32x16xf32>
    %8 = tpu.matmul %0, %7, %cst_11 {dimension_numbers = #tpu.dot_dimension_numbers<[1], [0], [0], [1], [0, 0, 1, 1], [], []>} : vector<32x8xf32>, vector<8x16xf32>, vector<32x16xf32> -> vector<32x16xf32>
    %cst_12 = arith.constant dense<0.000000e+00> : vector<32x64xf32>
    %9 = tpu.matmul %8, %1, %cst_12 {dimension_numbers = #tpu.dot_dimension_numbers<[1], [0], [0], [1], [0, 0, 1, 1], [], []>} : vector<32x16xf32>, vector<16x64xf32>, vector<32x64xf32> -> vector<32x64xf32>
    %c0_13 = arith.constant 0 : index
    %c2 = arith.constant 2 : index
    %c0_14 = arith.constant 0 : index
    %c0_15 = arith.constant 0 : index
    %10 = vector.load %arg3[%c0_13, %c2, %c0_14, %c0_15] : memref<1x4x8x16xf32, #tpu.memory_space<vmem>>, vector<1x1x8x16xf32>
    %11 = vector.shape_cast %10 : vector<1x1x8x16xf32> to vector<8x16xf32>
    %cst_16 = arith.constant dense<0.000000e+00> : vector<32x16xf32>
    %12 = tpu.matmul %0, %11, %cst_16 {dimension_numbers = #tpu.dot_dimension_numbers<[1], [0], [0], [1], [0, 0, 1, 1], [], []>} : vector<32x8xf32>, vector<8x16xf32>, vector<32x16xf32> -> vector<32x16xf32>
    %cst_17 = arith.constant dense<0.000000e+00> : vector<32x64xf32>
    %13 = tpu.matmul %12, %1, %cst_17 {dimension_numbers = #tpu.dot_dimension_numbers<[1], [0], [0], [1], [0, 0, 1, 1], [], []>} : vector<32x16xf32>, vector<16x64xf32>, vector<32x64xf32> -> vector<32x64xf32>
    %c0_18 = arith.constant 0 : index
    %c3 = arith.constant 3 : index
    %c0_19 = arith.constant 0 : index
    %c0_20 = arith.constant 0 : index
    %14 = vector.load %arg3[%c0_18, %c3, %c0_19, %c0_20] : memref<1x4x8x16xf32, #tpu.memory_space<vmem>>, vector<1x1x8x16xf32>
    %15 = vector.shape_cast %14 : vector<1x1x8x16xf32> to vector<8x16xf32>
    %cst_21 = arith.constant dense<0.000000e+00> : vector<32x16xf32>
    %16 = tpu.matmul %0, %15, %cst_21 {dimension_numbers = #tpu.dot_dimension_numbers<[1], [0], [0], [1], [0, 0, 1, 1], [], []>} : vector<32x8xf32>, vector<8x16xf32>, vector<32x16xf32> -> vector<32x16xf32>
    %cst_22 = arith.constant dense<0.000000e+00> : vector<32x64xf32>
    %17 = tpu.matmul %16, %1, %cst_22 {dimension_numbers = #tpu.dot_dimension_numbers<[1], [0], [0], [1], [0, 0, 1, 1], [], []>} : vector<32x16xf32>, vector<16x64xf32>, vector<32x64xf32> -> vector<32x64xf32>
    %c0_23 = arith.constant 0 : index
    %c0_24 = arith.constant 0 : index
    %c0_25 = arith.constant 0 : index
    %c0_26 = arith.constant 0 : index
    %18 = vector.load %arg4[%c0_23, %c0_24, %c0_25, %c0_26] : memref<4x8x32x64xf32, #tpu.memory_space<vmem>>, vector<1x1x32x64xf32>
    %19 = vector.shape_cast %18 : vector<1x1x32x64xf32> to vector<32x64xf32>
    %20 = arith.mulf %5, %19 : vector<32x64xf32>
    %c0_27 = arith.constant 0 : index
    %c0_28 = arith.constant 0 : index
    %c0_29 = arith.constant 0 : index
    %21 = vector.load %arg7[%c0_27, %c0_28, %c0_29] : memref<8x1x64xf32, #tpu.memory_space<vmem>>, vector<1x1x64xf32>
    %22 = vector.shape_cast %21 : vector<1x1x64xf32> to vector<1x64xf32>
    %23 = vector.broadcast %22 : vector<1x64xf32> to vector<32x64xf32>
    %24 = arith.addf %20, %23 : vector<32x64xf32>
    %c1_30 = arith.constant 1 : index
    %c0_31 = arith.constant 0 : index
    %c0_32 = arith.constant 0 : index
    %c0_33 = arith.constant 0 : index
    %25 = vector.load %arg4[%c1_30, %c0_31, %c0_32, %c0_33] : memref<4x8x32x64xf32, #tpu.memory_space<vmem>>, vector<1x1x32x64xf32>
    %26 = vector.shape_cast %25 : vector<1x1x32x64xf32> to vector<32x64xf32>
    %27 = arith.mulf %9, %26 : vector<32x64xf32>
    %28 = arith.addf %24, %27 : vector<32x64xf32>
    %c2_34 = arith.constant 2 : index
    %c0_35 = arith.constant 0 : index
    %c0_36 = arith.constant 0 : index
    %c0_37 = arith.constant 0 : index
    %29 = vector.load %arg4[%c2_34, %c0_35, %c0_36, %c0_37] : memref<4x8x32x64xf32, #tpu.memory_space<vmem>>, vector<1x1x32x64xf32>
    %30 = vector.shape_cast %29 : vector<1x1x32x64xf32> to vector<32x64xf32>
    %31 = arith.mulf %13, %30 : vector<32x64xf32>
    %32 = arith.addf %28, %31 : vector<32x64xf32>
    %c3_38 = arith.constant 3 : index
    %c0_39 = arith.constant 0 : index
    %c0_40 = arith.constant 0 : index
    %c0_41 = arith.constant 0 : index
    %33 = vector.load %arg4[%c3_38, %c0_39, %c0_40, %c0_41] : memref<4x8x32x64xf32, #tpu.memory_space<vmem>>, vector<1x1x32x64xf32>
    %34 = vector.shape_cast %33 : vector<1x1x32x64xf32> to vector<32x64xf32>
    %35 = arith.mulf %17, %34 : vector<32x64xf32>
    %36 = arith.addf %32, %35 : vector<32x64xf32>
    %c0_42 = arith.constant 0 : index
    %c0_43 = arith.constant 0 : index
    %c0_44 = arith.constant 0 : index
    %c0_45 = arith.constant 0 : index
    %37 = vector.load %arg8[%c0_42, %c0_43, %c0_44, %c0_45] : memref<1x8x32x64xf32, #tpu.memory_space<vmem>>, vector<1x1x32x64xf32>
    %38 = vector.shape_cast %37 : vector<1x1x32x64xf32> to vector<32x64xf32>
    %39 = vector.shape_cast %36 : vector<32x64xf32> to vector<1x1x32x64xf32>
    tpu.vector_store %arg8[%c0_42, %c0_43, %c0_44, %c0_45], %39 {strides = array<i32>} : memref<1x8x32x64xf32, #tpu.memory_space<vmem>>, vector<1x1x32x64xf32>,
    %c0_46 = arith.constant 0 : index
    %c1_47 = arith.constant 1 : index
    %c0_48 = arith.constant 0 : index
    %c0_49 = arith.constant 0 : index
    %40 = vector.load %arg4[%c0_46, %c1_47, %c0_48, %c0_49] : memref<4x8x32x64xf32, #tpu.memory_space<vmem>>, vector<1x1x32x64xf32>
    %41 = vector.shape_cast %40 : vector<1x1x32x64xf32> to vector<32x64xf32>
    %42 = arith.mulf %5, %41 : vector<32x64xf32>
    %c1_50 = arith.constant 1 : index
    %c0_51 = arith.constant 0 : index
    %c0_52 = arith.constant 0 : index
    %43 = vector.load %arg7[%c1_50, %c0_51, %c0_52] : memref<8x1x64xf32, #tpu.memory_space<vmem>>, vector<1x1x64xf32>
    %44 = vector.shape_cast %43 : vector<1x1x64xf32> to vector<1x64xf32>
    %45 = vector.broadcast %44 : vector<1x64xf32> to vector<32x64xf32>
    %46 = arith.addf %42, %45 : vector<32x64xf32>
    %c1_53 = arith.constant 1 : index
    %c1_54 = arith.constant 1 : index
    %c0_55 = arith.constant 0 : index
    %c0_56 = arith.constant 0 : index
    %47 = vector.load %arg4[%c1_53, %c1_54, %c0_55, %c0_56] : memref<4x8x32x64xf32, #tpu.memory_space<vmem>>, vector<1x1x32x64xf32>
    %48 = vector.shape_cast %47 : vector<1x1x32x64xf32> to vector<32x64xf32>
    %49 = arith.mulf %9, %48 : vector<32x64xf32>
    %50 = arith.addf %46, %49 : vector<32x64xf32>
    %c2_57 = arith.constant 2 : index
    %c1_58 = arith.constant 1 : index
    %c0_59 = arith.constant 0 : index
    %c0_60 = arith.constant 0 : index
    %51 = vector.load %arg4[%c2_57, %c1_58, %c0_59, %c0_60] : memref<4x8x32x64xf32, #tpu.memory_space<vmem>>, vector<1x1x32x64xf32>
    %52 = vector.shape_cast %51 : vector<1x1x32x64xf32> to vector<32x64xf32>
    %53 = arith.mulf %13, %52 : vector<32x64xf32>
    %54 = arith.addf %50, %53 : vector<32x64xf32>
    %c3_61 = arith.constant 3 : index
    %c1_62 = arith.constant 1 : index
    %c0_63 = arith.constant 0 : index
    %c0_64 = arith.constant 0 : index
    %55 = vector.load %arg4[%c3_61, %c1_62, %c0_63, %c0_64] : memref<4x8x32x64xf32, #tpu.memory_space<vmem>>, vector<1x1x32x64xf32>
    %56 = vector.shape_cast %55 : vector<1x1x32x64xf32> to vector<32x64xf32>
    %57 = arith.mulf %17, %56 : vector<32x64xf32>
    %58 = arith.addf %54, %57 : vector<32x64xf32>
    %c0_65 = arith.constant 0 : index
    %c1_66 = arith.constant 1 : index
    %c0_67 = arith.constant 0 : index
    %c0_68 = arith.constant 0 : index
    %59 = vector.load %arg8[%c0_65, %c1_66, %c0_67, %c0_68] : memref<1x8x32x64xf32, #tpu.memory_space<vmem>>, vector<1x1x32x64xf32>
    %60 = vector.shape_cast %59 : vector<1x1x32x64xf32> to vector<32x64xf32>
    %61 = vector.shape_cast %58 : vector<32x64xf32> to vector<1x1x32x64xf32>
    tpu.vector_store %arg8[%c0_65, %c1_66, %c0_67, %c0_68], %61 {strides = array<i32>} : memref<1x8x32x64xf32, #tpu.memory_space<vmem>>, vector<1x1x32x64xf32>,
    %c0_69 = arith.constant 0 : index
    %c2_70 = arith.constant 2 : index
    %c0_71 = arith.constant 0 : index
    %c0_72 = arith.constant 0 : index
    %62 = vector.load %arg4[%c0_69, %c2_70, %c0_71, %c0_72] : memref<4x8x32x64xf32, #tpu.memory_space<vmem>>, vector<1x1x32x64xf32>
    %63 = vector.shape_cast %62 : vector<1x1x32x64xf32> to vector<32x64xf32>
    %64 = arith.mulf %5, %63 : vector<32x64xf32>
    %c2_73 = arith.constant 2 : index
    %c0_74 = arith.constant 0 : index
    %c0_75 = arith.constant 0 : index
    %65 = vector.load %arg7[%c2_73, %c0_74, %c0_75] : memref<8x1x64xf32, #tpu.memory_space<vmem>>, vector<1x1x64xf32>
    %66 = vector.shape_cast %65 : vector<1x1x64xf32> to vector<1x64xf32>
    %67 = vector.broadcast %66 : vector<1x64xf32> to vector<32x64xf32>
    %68 = arith.addf %64, %67 : vector<32x64xf32>
    %c1_76 = arith.constant 1 : index
    %c2_77 = arith.constant 2 : index
    %c0_78 = arith.constant 0 : index
    %c0_79 = arith.constant 0 : index
    %69 = vector.load %arg4[%c1_76, %c2_77, %c0_78, %c0_79] : memref<4x8x32x64xf32, #tpu.memory_space<vmem>>, vector<1x1x32x64xf32>
    %70 = vector.shape_cast %69 : vector<1x1x32x64xf32> to vector<32x64xf32>
    %71 = arith.mulf %9, %70 : vector<32x64xf32>
    %72 = arith.addf %68, %71 : vector<32x64xf32>
    %c2_80 = arith.constant 2 : index
    %c2_81 = arith.constant 2 : index
    %c0_82 = arith.constant 0 : index
    %c0_83 = arith.constant 0 : index
    %73 = vector.load %arg4[%c2_80, %c2_81, %c0_82, %c0_83] : memref<4x8x32x64xf32, #tpu.memory_space<vmem>>, vector<1x1x32x64xf32>
    %74 = vector.shape_cast %73 : vector<1x1x32x64xf32> to vector<32x64xf32>
    %75 = arith.mulf %13, %74 : vector<32x64xf32>
    %76 = arith.addf %72, %75 : vector<32x64xf32>
    %c3_84 = arith.constant 3 : index
    %c2_85 = arith.constant 2 : index
    %c0_86 = arith.constant 0 : index
    %c0_87 = arith.constant 0 : index
    %77 = vector.load %arg4[%c3_84, %c2_85, %c0_86, %c0_87] : memref<4x8x32x64xf32, #tpu.memory_space<vmem>>, vector<1x1x32x64xf32>
    %78 = vector.shape_cast %77 : vector<1x1x32x64xf32> to vector<32x64xf32>
    %79 = arith.mulf %17, %78 : vector<32x64xf32>
    %80 = arith.addf %76, %79 : vector<32x64xf32>
    %c0_88 = arith.constant 0 : index
    %c2_89 = arith.constant 2 : index
    %c0_90 = arith.constant 0 : index
    %c0_91 = arith.constant 0 : index
    %81 = vector.load %arg8[%c0_88, %c2_89, %c0_90, %c0_91] : memref<1x8x32x64xf32, #tpu.memory_space<vmem>>, vector<1x1x32x64xf32>
    %82 = vector.shape_cast %81 : vector<1x1x32x64xf32> to vector<32x64xf32>
    %83 = vector.shape_cast %80 : vector<32x64xf32> to vector<1x1x32x64xf32>
    tpu.vector_store %arg8[%c0_88, %c2_89, %c0_90, %c0_91], %83 {strides = array<i32>} : memref<1x8x32x64xf32, #tpu.memory_space<vmem>>, vector<1x1x32x64xf32>,
    %c0_92 = arith.constant 0 : index
    %c3_93 = arith.constant 3 : index
    %c0_94 = arith.constant 0 : index
    %c0_95 = arith.constant 0 : index
    %84 = vector.load %arg4[%c0_92, %c3_93, %c0_94, %c0_95] : memref<4x8x32x64xf32, #tpu.memory_space<vmem>>, vector<1x1x32x64xf32>
    %85 = vector.shape_cast %84 : vector<1x1x32x64xf32> to vector<32x64xf32>
    %86 = arith.mulf %5, %85 : vector<32x64xf32>
    %c3_96 = arith.constant 3 : index
    %c0_97 = arith.constant 0 : index
    %c0_98 = arith.constant 0 : index
    %87 = vector.load %arg7[%c3_96, %c0_97, %c0_98] : memref<8x1x64xf32, #tpu.memory_space<vmem>>, vector<1x1x64xf32>
    %88 = vector.shape_cast %87 : vector<1x1x64xf32> to vector<1x64xf32>
    %89 = vector.broadcast %88 : vector<1x64xf32> to vector<32x64xf32>
    %90 = arith.addf %86, %89 : vector<32x64xf32>
    %c1_99 = arith.constant 1 : index
    %c3_100 = arith.constant 3 : index
    %c0_101 = arith.constant 0 : index
    %c0_102 = arith.constant 0 : index
    %91 = vector.load %arg4[%c1_99, %c3_100, %c0_101, %c0_102] : memref<4x8x32x64xf32, #tpu.memory_space<vmem>>, vector<1x1x32x64xf32>
    %92 = vector.shape_cast %91 : vector<1x1x32x64xf32> to vector<32x64xf32>
    %93 = arith.mulf %9, %92 : vector<32x64xf32>
    %94 = arith.addf %90, %93 : vector<32x64xf32>
    %c2_103 = arith.constant 2 : index
    %c3_104 = arith.constant 3 : index
    %c0_105 = arith.constant 0 : index
    %c0_106 = arith.constant 0 : index
    %95 = vector.load %arg4[%c2_103, %c3_104, %c0_105, %c0_106] : memref<4x8x32x64xf32, #tpu.memory_space<vmem>>, vector<1x1x32x64xf32>
    %96 = vector.shape_cast %95 : vector<1x1x32x64xf32> to vector<32x64xf32>
    %97 = arith.mulf %13, %96 : vector<32x64xf32>
    %98 = arith.addf %94, %97 : vector<32x64xf32>
    %c3_107 = arith.constant 3 : index
    %c3_108 = arith.constant 3 : index
    %c0_109 = arith.constant 0 : index
    %c0_110 = arith.constant 0 : index
    %99 = vector.load %arg4[%c3_107, %c3_108, %c0_109, %c0_110] : memref<4x8x32x64xf32, #tpu.memory_space<vmem>>, vector<1x1x32x64xf32>
    %100 = vector.shape_cast %99 : vector<1x1x32x64xf32> to vector<32x64xf32>
    %101 = arith.mulf %17, %100 : vector<32x64xf32>
    %102 = arith.addf %98, %101 : vector<32x64xf32>
    %c0_111 = arith.constant 0 : index
    %c3_112 = arith.constant 3 : index
    %c0_113 = arith.constant 0 : index
    %c0_114 = arith.constant 0 : index
    %103 = vector.load %arg8[%c0_111, %c3_112, %c0_113, %c0_114] : memref<1x8x32x64xf32, #tpu.memory_space<vmem>>, vector<1x1x32x64xf32>
    %104 = vector.shape_cast %103 : vector<1x1x32x64xf32> to vector<32x64xf32>
    %105 = vector.shape_cast %102 : vector<32x64xf32> to vector<1x1x32x64xf32>
    tpu.vector_store %arg8[%c0_111, %c3_112, %c0_113, %c0_114], %105 {strides = array<i32>} : memref<1x8x32x64xf32, #tpu.memory_space<vmem>>, vector<1x1x32x64xf32>,
    %c0_115 = arith.constant 0 : index
    %c4 = arith.constant 4 : index
    %c0_116 = arith.constant 0 : index
    %c0_117 = arith.constant 0 : index
    %106 = vector.load %arg4[%c0_115, %c4, %c0_116, %c0_117] : memref<4x8x32x64xf32, #tpu.memory_space<vmem>>, vector<1x1x32x64xf32>
    %107 = vector.shape_cast %106 : vector<1x1x32x64xf32> to vector<32x64xf32>
    %108 = arith.mulf %5, %107 : vector<32x64xf32>
    %c4_118 = arith.constant 4 : index
    %c0_119 = arith.constant 0 : index
    %c0_120 = arith.constant 0 : index
    %109 = vector.load %arg7[%c4_118, %c0_119, %c0_120] : memref<8x1x64xf32, #tpu.memory_space<vmem>>, vector<1x1x64xf32>
    %110 = vector.shape_cast %109 : vector<1x1x64xf32> to vector<1x64xf32>
    %111 = vector.broadcast %110 : vector<1x64xf32> to vector<32x64xf32>
    %112 = arith.addf %108, %111 : vector<32x64xf32>
    %c1_121 = arith.constant 1 : index
    %c4_122 = arith.constant 4 : index
    %c0_123 = arith.constant 0 : index
    %c0_124 = arith.constant 0 : index
    %113 = vector.load %arg4[%c1_121, %c4_122, %c0_123, %c0_124] : memref<4x8x32x64xf32, #tpu.memory_space<vmem>>, vector<1x1x32x64xf32>
    %114 = vector.shape_cast %113 : vector<1x1x32x64xf32> to vector<32x64xf32>
    %115 = arith.mulf %9, %114 : vector<32x64xf32>
    %116 = arith.addf %112, %115 : vector<32x64xf32>
    %c2_125 = arith.constant 2 : index
    %c4_126 = arith.constant 4 : index
    %c0_127 = arith.constant 0 : index
    %c0_128 = arith.constant 0 : index
    %117 = vector.load %arg4[%c2_125, %c4_126, %c0_127, %c0_128] : memref<4x8x32x64xf32, #tpu.memory_space<vmem>>, vector<1x1x32x64xf32>
    %118 = vector.shape_cast %117 : vector<1x1x32x64xf32> to vector<32x64xf32>
    %119 = arith.mulf %13, %118 : vector<32x64xf32>
    %120 = arith.addf %116, %119 : vector<32x64xf32>
    %c3_129 = arith.constant 3 : index
    %c4_130 = arith.constant 4 : index
    %c0_131 = arith.constant 0 : index
    %c0_132 = arith.constant 0 : index
    %121 = vector.load %arg4[%c3_129, %c4_130, %c0_131, %c0_132] : memref<4x8x32x64xf32, #tpu.memory_space<vmem>>, vector<1x1x32x64xf32>
    %122 = vector.shape_cast %121 : vector<1x1x32x64xf32> to vector<32x64xf32>
    %123 = arith.mulf %17, %122 : vector<32x64xf32>
    %124 = arith.addf %120, %123 : vector<32x64xf32>
    %c0_133 = arith.constant 0 : index
    %c4_134 = arith.constant 4 : index
    %c0_135 = arith.constant 0 : index
    %c0_136 = arith.constant 0 : index
    %125 = vector.load %arg8[%c0_133, %c4_134, %c0_135, %c0_136] : memref<1x8x32x64xf32, #tpu.memory_space<vmem>>, vector<1x1x32x64xf32>
    %126 = vector.shape_cast %125 : vector<1x1x32x64xf32> to vector<32x64xf32>
    %127 = vector.shape_cast %124 : vector<32x64xf32> to vector<1x1x32x64xf32>
    tpu.vector_store %arg8[%c0_133, %c4_134, %c0_135, %c0_136], %127 {strides = array<i32>} : memref<1x8x32x64xf32, #tpu.memory_space<vmem>>, vector<1x1x32x64xf32>,
    %c0_137 = arith.constant 0 : index
    %c5 = arith.constant 5 : index
    %c0_138 = arith.constant 0 : index
    %c0_139 = arith.constant 0 : index
    %128 = vector.load %arg4[%c0_137, %c5, %c0_138, %c0_139] : memref<4x8x32x64xf32, #tpu.memory_space<vmem>>, vector<1x1x32x64xf32>
    %129 = vector.shape_cast %128 : vector<1x1x32x64xf32> to vector<32x64xf32>
    %130 = arith.mulf %5, %129 : vector<32x64xf32>
    %c5_140 = arith.constant 5 : index
    %c0_141 = arith.constant 0 : index
    %c0_142 = arith.constant 0 : index
    %131 = vector.load %arg7[%c5_140, %c0_141, %c0_142] : memref<8x1x64xf32, #tpu.memory_space<vmem>>, vector<1x1x64xf32>
    %132 = vector.shape_cast %131 : vector<1x1x64xf32> to vector<1x64xf32>
    %133 = vector.broadcast %132 : vector<1x64xf32> to vector<32x64xf32>
    %134 = arith.addf %130, %133 : vector<32x64xf32>
    %c1_143 = arith.constant 1 : index
    %c5_144 = arith.constant 5 : index
    %c0_145 = arith.constant 0 : index
    %c0_146 = arith.constant 0 : index
    %135 = vector.load %arg4[%c1_143, %c5_144, %c0_145, %c0_146] : memref<4x8x32x64xf32, #tpu.memory_space<vmem>>, vector<1x1x32x64xf32>
    %136 = vector.shape_cast %135 : vector<1x1x32x64xf32> to vector<32x64xf32>
    %137 = arith.mulf %9, %136 : vector<32x64xf32>
    %138 = arith.addf %134, %137 : vector<32x64xf32>
    %c2_147 = arith.constant 2 : index
    %c5_148 = arith.constant 5 : index
    %c0_149 = arith.constant 0 : index
    %c0_150 = arith.constant 0 : index
    %139 = vector.load %arg4[%c2_147, %c5_148, %c0_149, %c0_150] : memref<4x8x32x64xf32, #tpu.memory_space<vmem>>, vector<1x1x32x64xf32>
    %140 = vector.shape_cast %139 : vector<1x1x32x64xf32> to vector<32x64xf32>
    %141 = arith.mulf %13, %140 : vector<32x64xf32>
    %142 = arith.addf %138, %141 : vector<32x64xf32>
    %c3_151 = arith.constant 3 : index
    %c5_152 = arith.constant 5 : index
    %c0_153 = arith.constant 0 : index
    %c0_154 = arith.constant 0 : index
    %143 = vector.load %arg4[%c3_151, %c5_152, %c0_153, %c0_154] : memref<4x8x32x64xf32, #tpu.memory_space<vmem>>, vector<1x1x32x64xf32>
    %144 = vector.shape_cast %143 : vector<1x1x32x64xf32> to vector<32x64xf32>
    %145 = arith.mulf %17, %144 : vector<32x64xf32>
    %146 = arith.addf %142, %145 : vector<32x64xf32>
    %c0_155 = arith.constant 0 : index
    %c5_156 = arith.constant 5 : index
    %c0_157 = arith.constant 0 : index
    %c0_158 = arith.constant 0 : index
    %147 = vector.load %arg8[%c0_155, %c5_156, %c0_157, %c0_158] : memref<1x8x32x64xf32, #tpu.memory_space<vmem>>, vector<1x1x32x64xf32>
    %148 = vector.shape_cast %147 : vector<1x1x32x64xf32> to vector<32x64xf32>
    %149 = vector.shape_cast %146 : vector<32x64xf32> to vector<1x1x32x64xf32>
    tpu.vector_store %arg8[%c0_155, %c5_156, %c0_157, %c0_158], %149 {strides = array<i32>} : memref<1x8x32x64xf32, #tpu.memory_space<vmem>>, vector<1x1x32x64xf32>,
    %c0_159 = arith.constant 0 : index
    %c6 = arith.constant 6 : index
    %c0_160 = arith.constant 0 : index
    %c0_161 = arith.constant 0 : index
    %150 = vector.load %arg4[%c0_159, %c6, %c0_160, %c0_161] : memref<4x8x32x64xf32, #tpu.memory_space<vmem>>, vector<1x1x32x64xf32>
    %151 = vector.shape_cast %150 : vector<1x1x32x64xf32> to vector<32x64xf32>
    %152 = arith.mulf %5, %151 : vector<32x64xf32>
    %c6_162 = arith.constant 6 : index
    %c0_163 = arith.constant 0 : index
    %c0_164 = arith.constant 0 : index
    %153 = vector.load %arg7[%c6_162, %c0_163, %c0_164] : memref<8x1x64xf32, #tpu.memory_space<vmem>>, vector<1x1x64xf32>
    %154 = vector.shape_cast %153 : vector<1x1x64xf32> to vector<1x64xf32>
    %155 = vector.broadcast %154 : vector<1x64xf32> to vector<32x64xf32>
    %156 = arith.addf %152, %155 : vector<32x64xf32>
    %c1_165 = arith.constant 1 : index
    %c6_166 = arith.constant 6 : index
    %c0_167 = arith.constant 0 : index
    %c0_168 = arith.constant 0 : index
    %157 = vector.load %arg4[%c1_165, %c6_166, %c0_167, %c0_168] : memref<4x8x32x64xf32, #tpu.memory_space<vmem>>, vector<1x1x32x64xf32>
    %158 = vector.shape_cast %157 : vector<1x1x32x64xf32> to vector<32x64xf32>
    %159 = arith.mulf %9, %158 : vector<32x64xf32>
    %160 = arith.addf %156, %159 : vector<32x64xf32>
    %c2_169 = arith.constant 2 : index
    %c6_170 = arith.constant 6 : index
    %c0_171 = arith.constant 0 : index
    %c0_172 = arith.constant 0 : index
    %161 = vector.load %arg4[%c2_169, %c6_170, %c0_171, %c0_172] : memref<4x8x32x64xf32, #tpu.memory_space<vmem>>, vector<1x1x32x64xf32>
    %162 = vector.shape_cast %161 : vector<1x1x32x64xf32> to vector<32x64xf32>
    %163 = arith.mulf %13, %162 : vector<32x64xf32>
    %164 = arith.addf %160, %163 : vector<32x64xf32>
    %c3_173 = arith.constant 3 : index
    %c6_174 = arith.constant 6 : index
    %c0_175 = arith.constant 0 : index
    %c0_176 = arith.constant 0 : index
    %165 = vector.load %arg4[%c3_173, %c6_174, %c0_175, %c0_176] : memref<4x8x32x64xf32, #tpu.memory_space<vmem>>, vector<1x1x32x64xf32>
    %166 = vector.shape_cast %165 : vector<1x1x32x64xf32> to vector<32x64xf32>
    %167 = arith.mulf %17, %166 : vector<32x64xf32>
    %168 = arith.addf %164, %167 : vector<32x64xf32>
    %c0_177 = arith.constant 0 : index
    %c6_178 = arith.constant 6 : index
    %c0_179 = arith.constant 0 : index
    %c0_180 = arith.constant 0 : index
    %169 = vector.load %arg8[%c0_177, %c6_178, %c0_179, %c0_180] : memref<1x8x32x64xf32, #tpu.memory_space<vmem>>, vector<1x1x32x64xf32>
    %170 = vector.shape_cast %169 : vector<1x1x32x64xf32> to vector<32x64xf32>
    %171 = vector.shape_cast %168 : vector<32x64xf32> to vector<1x1x32x64xf32>
    tpu.vector_store %arg8[%c0_177, %c6_178, %c0_179, %c0_180], %171 {strides = array<i32>} : memref<1x8x32x64xf32, #tpu.memory_space<vmem>>, vector<1x1x32x64xf32>,
    %c0_181 = arith.constant 0 : index
    %c7 = arith.constant 7 : index
    %c0_182 = arith.constant 0 : index
    %c0_183 = arith.constant 0 : index
    %172 = vector.load %arg4[%c0_181, %c7, %c0_182, %c0_183] : memref<4x8x32x64xf32, #tpu.memory_space<vmem>>, vector<1x1x32x64xf32>
    %173 = vector.shape_cast %172 : vector<1x1x32x64xf32> to vector<32x64xf32>
    %174 = arith.mulf %5, %173 : vector<32x64xf32>
    %c7_184 = arith.constant 7 : index
    %c0_185 = arith.constant 0 : index
    %c0_186 = arith.constant 0 : index
    %175 = vector.load %arg7[%c7_184, %c0_185, %c0_186] : memref<8x1x64xf32, #tpu.memory_space<vmem>>, vector<1x1x64xf32>
    %176 = vector.shape_cast %175 : vector<1x1x64xf32> to vector<1x64xf32>
    %177 = vector.broadcast %176 : vector<1x64xf32> to vector<32x64xf32>
    %178 = arith.addf %174, %177 : vector<32x64xf32>
    %c1_187 = arith.constant 1 : index
    %c7_188 = arith.constant 7 : index
    %c0_189 = arith.constant 0 : index
    %c0_190 = arith.constant 0 : index
    %179 = vector.load %arg4[%c1_187, %c7_188, %c0_189, %c0_190] : memref<4x8x32x64xf32, #tpu.memory_space<vmem>>, vector<1x1x32x64xf32>
    %180 = vector.shape_cast %179 : vector<1x1x32x64xf32> to vector<32x64xf32>
    %181 = arith.mulf %9, %180 : vector<32x64xf32>
    %182 = arith.addf %178, %181 : vector<32x64xf32>
    %c2_191 = arith.constant 2 : index
    %c7_192 = arith.constant 7 : index
    %c0_193 = arith.constant 0 : index
    %c0_194 = arith.constant 0 : index
    %183 = vector.load %arg4[%c2_191, %c7_192, %c0_193, %c0_194] : memref<4x8x32x64xf32, #tpu.memory_space<vmem>>, vector<1x1x32x64xf32>
    %184 = vector.shape_cast %183 : vector<1x1x32x64xf32> to vector<32x64xf32>
    %185 = arith.mulf %13, %184 : vector<32x64xf32>
    %186 = arith.addf %182, %185 : vector<32x64xf32>
    %c3_195 = arith.constant 3 : index
    %c7_196 = arith.constant 7 : index
    %c0_197 = arith.constant 0 : index
    %c0_198 = arith.constant 0 : index
    %187 = vector.load %arg4[%c3_195, %c7_196, %c0_197, %c0_198] : memref<4x8x32x64xf32, #tpu.memory_space<vmem>>, vector<1x1x32x64xf32>
    %188 = vector.shape_cast %187 : vector<1x1x32x64xf32> to vector<32x64xf32>
    %189 = arith.mulf %17, %188 : vector<32x64xf32>
    %190 = arith.addf %186, %189 : vector<32x64xf32>
    %c0_199 = arith.constant 0 : index
    %c7_200 = arith.constant 7 : index
    %c0_201 = arith.constant 0 : index
    %c0_202 = arith.constant 0 : index
    %191 = vector.load %arg8[%c0_199, %c7_200, %c0_201, %c0_202] : memref<1x8x32x64xf32, #tpu.memory_space<vmem>>, vector<1x1x32x64xf32>
    %192 = vector.shape_cast %191 : vector<1x1x32x64xf32> to vector<32x64xf32>
    %193 = vector.shape_cast %190 : vector<32x64xf32> to vector<1x1x32x64xf32>
    tpu.vector_store %arg8[%c0_199, %c7_200, %c0_201, %c0_202], %193 {strides = array<i32>} : memref<1x8x32x64xf32, #tpu.memory_space<vmem>>, vector<1x1x32x64xf32>,
    return
  }
  func.func @transform_0(%arg0: i32, %arg1: i32, %arg2: i32) -> (i32, i32, i32, i32) {
    %c0_i32 = arith.constant 0 : i32
    %c0_i32_0 = arith.constant 0 : i32
    return %arg0, %c0_i32, %arg1, %arg2 : i32, i32, i32, i32
  }
  func.func @transform_1(%arg0: i32, %arg1: i32, %arg2: i32) -> (i32, i32, i32, i32) {
    %c0_i32 = arith.constant 0 : i32
    %c0_i32_0 = arith.constant 0 : i32
    %c0_i32_1 = arith.constant 0 : i32
    %c0_i32_2 = arith.constant 0 : i32
    %c0_i32_3 = arith.constant 0 : i32
    return %c0_i32, %c0_i32_0, %c0_i32_1, %c0_i32_2 : i32, i32, i32, i32
  }
  func.func @transform_2(%arg0: i32, %arg1: i32, %arg2: i32) -> (i32, i32) {
    %c0_i32 = arith.constant 0 : i32
    %c0_i32_0 = arith.constant 0 : i32
    %c0_i32_1 = arith.constant 0 : i32
    return %c0_i32, %c0_i32_0 : i32, i32
  }
  func.func @transform_3(%arg0: i32, %arg1: i32, %arg2: i32) -> (i32, i32) {
    %c0_i32 = arith.constant 0 : i32
    %c0_i32_0 = arith.constant 0 : i32
    %c0_i32_1 = arith.constant 0 : i32
    return %c0_i32, %c0_i32_0 : i32, i32
  }
  func.func @transform_4(%arg0: i32, %arg1: i32, %arg2: i32) -> (i32, i32, i32) {
    %c0_i32 = arith.constant 0 : i32
    %c0_i32_0 = arith.constant 0 : i32
    %c0_i32_1 = arith.constant 0 : i32
    %c0_i32_2 = arith.constant 0 : i32
    return %c0_i32, %c0_i32_0, %c0_i32_1 : i32, i32, i32
  }
  func.func @transform_5(%arg0: i32, %arg1: i32, %arg2: i32) -> (i32, i32, i32, i32) {
    %c0_i32 = arith.constant 0 : i32
    %c0_i32_0 = arith.constant 0 : i32
    return %arg0, %c0_i32, %arg1, %arg2 : i32, i32, i32, i32
  }
}

</mosaic_0001>

<bundles_post_ra>
// kernel: upsample_block_forward.1
= control target key start
LH: loop header
LB: loop body
LE: loop exit
PB: predicated region body
PF: predicated region fallthrough
CT: control target
= control target key end

     0   :  { %s3368_s0 = inlined_call_operand.vmem [shape: f32[2,4,16,16], index: 0, kind: input, shape index: {}]   ;;  %s3369_s1 = inlined_call_operand.vmem [shape: f32[4,8,32,64], index: 1, kind: input, shape index: {}]   ;;  %s3370_s2 = inlined_call_operand.vmem [shape: f32[16,64], index: 2, kind: input, shape index: {}]   ;;  %s3371_s3 = inlined_call_operand.vmem [shape: f32[32,8], index: 3, kind: input, shape index: {}]   ;;  %s3372_s4 = inlined_call_operand.vmem [shape: f32[8,1,64], index: 4, kind: input, shape index: {}]   ;;  %s3373_s5 = inlined_call_operand.hbm [shape: f32[2,8,64,64], index: 5, kind: output, shape index: {}]  }
   0x1   :  { %3374 = sst [smem:[#allocation15_spill]] %s3368_s0 }
   0x2   :  { %10 = vsyncpa [#allocation4], 0 }
   0x3   :  { %12 = vsyncpa [#allocation4 + $0x1], 0  ;;  %s2247_s18 = smov 0   ;;  %s2249_s19 = smov 0  }
   0x4   :  { %s2251_s20 = smov 0   ;;  %s2253_s21 = smov 0  }
   0x5   :  { %s2255_s22 = smov 0   ;;  %s2257_s23 = smov 0  }
   0x6   :  { %s2259_s24 = smov 0   ;;  %s2261_s25 = smov 0  }
   0x7 LB: > { %s1708_s26 = sadd.s32 4294967295, %s2208_s25   ;;  %s1709_s27 = sadd.s32 4294967294, %s2208_s25   ;;  %s2208_s25 = sphi %s2261_s25, %s18_s25   ;;  %s2204_s24 = sphi %s2259_s24, %s3399_s24   ;;  %s2200_s23 = sphi %s2257_s23, %s3398_s23   ;;  %s2196_s22 = sphi %s2255_s22, %s3397_s22   ;;  %s2192_s21 = sphi %s2253_s21, %s3396_s21   ;;  %s2188_s20 = sphi %s2251_s20, %s3395_s20   ;;  %s2184_s19 = sphi %s2249_s19, %s3394_s19   ;;  %s2180_s18 = sphi %s2247_s18, %s3393_s18  }
   0x8   : > { %s33_s28 = sadd.s32 1, %s2200_s23  ;;  %s37_s29 = sadd.s32 1, %s2204_s24 }
   0x9   : > { %p35_p0 = scmp.ge.s32.totalorder %s33_s28, 2  ;;  %p55_p1 = scmp.ne.s32.totalorder %s2188_s20, %s2184_s19 }
   0xa   : > { %p56_p2 = scmp.eq.s32.totalorder %s2208_s25, 0  ;;  %p173_p5 = scmp.eq.s32.totalorder %s1708_s26, 3 }
   0xb   : > { %s3401_s28 = smov (%p35_p0, %s33_s28), 0  ;;  %s3403_s29 = smov (!%p35_p0, %s37_s29), %s2204_s24 }
   0xc   : > { %s42_s30 = ssub.s32 %s2200_s23, %s3401_s28  ;;  %p2299_p3 = por %p56_p2, %p55_p1 }
   0xd   : > { %p39_p4 = scmp.ge.s32.totalorder %s3403_s29, 2  ;;  %p178_p6 = scmp.ne.s32.totalorder %s2184_s19, %s2180_s18 }
   0xe   : > { %p179_p7 = scmp.eq.s32.totalorder %s1709_s27, 3  ;;  %p2307_p8 = por %p173_p5, %p55_p1 }
   0xf   : > { %s3405_s29 = smov (%p39_p4, %s3403_s29), 0  ;;  %s48_s11 = sadd.s32 1, %s2188_s20 }
  0x10   : > { %p2311_p9 = por %p179_p7, %p178_p6  ;;  %s41_s9 = ssub.s32 %s2204_s24, %s3405_s29 }
  0x11   : > { %s43_s10 = sor.u32 %s42_s30, %s41_s9  ;;  %p1711_p11 = scmp.ge.s32.totalorder %s2208_s25, 4 }
  0x12   : > { %p46_p10 = scmp.eq.s32.totalorder %s43_s10, 0 }
  0x13   : > { %207 = sbr.rel (%p1711_p11) target bundleno = 38 (0x26), region = 32 }
  0x14   : > { %s2319_s12 = scalar_select %p46_p10, %s2188_s20, %s48_s11  }
  0x1a   : > { %210 = sbr.rel (!%p2299_p3) target bundleno = 38 (0x26), region = 36  ;;  %s212_s13 = sand.u32 (%p2299_p3), 1, %s2188_s20  }
  0x1b   : > { %s1713_s14 = sshll.u32 (%p2299_p3), %s2204_s24, 3  ;;  %s1712_s15 = sshll.u32 (%p2299_p3), %s212_s13, 5 }
  0x1c   : > { %s217_s16 = sadd.s32 (%p2299_p3), %s2200_s23, %s1713_s14  ;;  %s3378_s0 = sld [smem:[#allocation15_spill]] (%p2299_p3) }
  0x1d   : > { %s1714_s17 = sshll.u32 (%p2299_p3), %s217_s16, 3  ;;  %s214_s9 = scalar_lea.vmem (%p2299_p3), [#allocation2], %s1712_s15 }
  0x22   : > { %s219_s30 = scalar_lea.vmem %s3378_s0, %s1714_s17 }
  0x23   : > { %v253_v0 = vld [vmem:[%s219_s30] sm:$0xff]  ;;  %v255_v1 = vld [vmem:[%s219_s30 + $0x10] sm:$0xff] }
  0x24   : > { %v257_v2 = vld [vmem:[%s219_s30 + $0x20] sm:$0xff]  ;;  %254 = vst [vmem:[%s214_s9] sm:$0xff] %v253_v0  ;;  %256 = vst [vmem:[%s214_s9 + $0x8] sm:$0xff] %v255_v1  ;;  %v259_v3 = vld [vmem:[%s219_s30 + $0x30] sm:$0xff] }
  0x25   : > { %258 = vst [vmem:[%s214_s9 + $0x10] sm:$0xff] %v257_v2  ;;  %260 = vst [vmem:[%s214_s9 + $0x18] sm:$0xff] %v259_v3 }
  0x26 PF: > { %p1715_p12 = scmp.ge.s32.totalorder %s2208_s25, 1  ;;  %p265_p13 = scmp.lt.s32.totalorder %s2208_s25, 5 }
  0x28   : > { %p266_p0 = pnand %p1715_p12, %p265_p13 }
  0x2a   : > { %269 = sbr.rel (%p266_p0) target bundleno = 564 (0x234), region = 74 }
  0x31   : > { %s2333_s6 = sand.u32 1, %s2184_s19   ;;  %v300_v4 = vld [vmem:[%s3371_s3] sm:$0xff]  ;;  %vm307_vm0 = vcmask 64512   ;;  %v305_v6 = vld [vmem:[%s3370_s2 + $0x8] sm:$0xff]  ;;  %v302_v11 = vld [vmem:[%s3371_s3 + $0x10] sm:$0xff]  ;;  %vm405_vm1 = vcmask 130048  }
  0x32   : > { %s1716_s13 = sshll.u32 %s2333_s6, 5  ;;  %1972 = vmatprep.mubr.msk.f32.mxu0 %vm307_vm0, %v300_v4  ;;  %v304_v5 = vld [vmem:[%s3370_s2] sm:$0xff]  ;;  %v301_v9 = vld [vmem:[%s3371_s3 + $0x8] sm:$0xff]  ;;  %v303_v13 = vld [vmem:[%s3371_s3 + $0x18] sm:$0xff]  ;;  %vm1113_vm2 = vcmask 523264   ;;  %s1717_s16 = sshll.u32 %s2333_s6, 8 }
  0x33   : > { %v2042_v7 = vpack.c.bf16 %v305_v6, %v304_v5  ;;  %s274_s26 = scalar_lea.vmem [#allocation2], %s1716_s13  ;;  %v1056_v31 = vld [vmem:[%s3369_s1 + $0x8] sm:$0xff]  ;;  %v2404_v36 = vld [vmem:[%s3372_s4] ss:$0 sm:$0xff]  ;;  %v2409_v37 = vld [vmem:[%s3372_s4 + $0x1] ss:$0 sm:$0xff] }
  0x34   : > { %v306_v8 = vld [vmem:[%s274_s26] sm:$0xff]  ;;  %v1726_v10 = vld [vmem:[%s274_s26 + $0x8] sm:$0xff]  ;;  %v1735_v12 = vld [vmem:[%s274_s26 + $0x10] sm:$0xff]  ;;  %s3141_s17 = scalar_lea.vmem [#allocation3], %s1717_s16  ;;  %s1574_s15 = scalar_lea.sflag [#allocation4], %s2333_s6 }
  0x35   : > { %1970 = vmatprep.subr.mxu0 %v306_v8  ;;  %2043 = vmatprep.subr.bf16.mxu1 %v2042_v7  ;;  %v1744_v14 = vld [vmem:[%s274_s26 + $0x18] sm:$0xff]  ;;  %v1767_v32 = vld [vmem:[%s3369_s1 + $0x28] sm:$0xff]  ;;  %v2414_v38 = vld [vmem:[%s3372_s4 + $0x2] ss:$0 sm:$0xff] }
  0x36   : > { %1971 = vmatpush3.msra.mxu0 %v306_v8  ;;  %2045 = vmatpush3.bf16.msra.mxu1 %v2042_v7  ;;  %v1789_v33 = vld [vmem:[%s3369_s1 + $0x48] sm:$0xff]  ;;  %v2419_v39 = vld [vmem:[%s3372_s4 + $0x3] ss:$0 sm:$0xff]  ;;  %v2424_v40 = vld [vmem:[%s3372_s4 + $0x4] ss:$0 sm:$0xff] }
  0x37   : > { %1973 = vmatmul.mubr.msk.f32.vlgmr.msra.gmra.mrb[0].mxu0 %vm307_vm0, %v301_v9  ;;  %1988 = vmatprep.subr.mxu0 %v1726_v10  ;;  %v1811_v34 = vld [vmem:[%s3369_s1 + $0x68] sm:$0xff]  ;;  %v2438_v45 = vld [vmem:[%s3372_s4 + $0x5] ss:$0 sm:$0xff]  ;;  %v2443_v46 = vld [vmem:[%s3372_s4 + $0x6] ss:$0 sm:$0xff] }
  0x38   : > { %1989 = vmatpush3.msra.mxu0 %v1726_v10  ;;  %1975 = vmatprep.mubr.msk.f32.mxu0 %vm307_vm0, %v302_v11  ;;  %v1833_v35 = vld [vmem:[%s3369_s1 + $0x88] sm:$0xff]  ;;  %v2448_v51 = vld [vmem:[%s3372_s4 + $0x7] ss:$0 sm:$0xff] }
  0x39   : > { %2006 = vmatprep.subr.mxu0 %v1735_v12  ;;  %2047 = vmatprep.subr.bf16.mxu1 %v2042_v7  ;;  %v1855_v41 = vld [vmem:[%s3369_s1 + $0xa8] sm:$0xff]  ;;  %v1055_v53 = vld [vmem:[%s3369_s1] sm:$0xff] }
  0x3a   : > { %v1877_v42 = vld [vmem:[%s3369_s1 + $0xc8] sm:$0xff]  ;;  %v1766_v54 = vld [vmem:[%s3369_s1 + $0x20] sm:$0xff] }
  0x3b   : > { %1976 = vmatmul.mubr.msk.f32.gmra.mrb[2].mxu0 %vm307_vm0, %v303_v13  ;;  %v1899_v43 = vld [vmem:[%s3369_s1 + $0xe8] sm:$0xff]  ;;  %v1788_v59 = vld [vmem:[%s3369_s1 + $0x40] sm:$0xff] }
  0x3c   : > { %1990 = vmatprep.mubr.msk.f32.mxu0 %vm307_vm0, %v300_v4  ;;  %v1810_v60 = vld [vmem:[%s3369_s1 + $0x60] sm:$0xff] }
  0x3d   : > { %v1832_v61 = vld [vmem:[%s3369_s1 + $0x80] sm:$0xff] }
  0x3e   : > { %v1854_v2 = vld [vmem:[%s3369_s1 + $0xa0] sm:$0xff] }
  0x3f   : > { %1991 = vmatmul.mubr.msk.f32.vlgmr.msra.gmra.mrb[4].mxu0 %vm307_vm0, %v301_v9  ;;  %v1876_v3 = vld [vmem:[%s3369_s1 + $0xc0] sm:$0xff] }
  0x40   : > { %2007 = vmatpush3.msra.mxu0 %v1735_v12  ;;  %1993 = vmatprep.mubr.msk.f32.mxu0 %vm307_vm0, %v302_v11 }
  0x41   : > { %2024 = vmatprep.subr.mxu0 %v1744_v14 }
  0x43   : > { %1994 = vmatmul.mubr.msk.f32.gmra.mrb[6].mxu0 %vm307_vm0, %v303_v13 }
  0x44   : > { %2008 = vmatprep.mubr.msk.f32.mxu0 %vm307_vm0, %v300_v4 }
  0x47   : > { %2009 = vmatmul.mubr.msk.f32.vlgmr.msra.gmra.mrb[8].mxu0 %vm307_vm0, %v301_v9 }
  0x48   : > { %2025 = vmatpush3.msra.mxu0 %v1744_v14  ;;  %2011 = vmatprep.mubr.msk.f32.mxu0 %vm307_vm0, %v302_v11  ;;  %v1058_v14 = vld [vmem:[%s3369_s1 + $0x18] sm:$0xff] }
  0x4b   : > { %2012 = vmatmul.mubr.msk.f32.gmra.mrb[10].mxu0 %vm307_vm0, %v303_v13 }
  0x4c   : > { %2026 = vmatprep.mubr.msk.f32.mxu0 %vm307_vm0, %v300_v4  ;;  %v1898_v4 = vld [vmem:[%s3369_s1 + $0xe0] sm:$0xff] }
  0x4f   : > { %2027 = vmatmul.mubr.msk.f32.vlgmr.msra.gmra.mrb[12].mxu0 %vm307_vm0, %v301_v9 }
  0x50   : > { %2029 = vmatprep.mubr.msk.f32.mxu0 %vm307_vm0, %v302_v11 }
  0x53   : > { %2030 = vmatmul.mubr.msk.f32.gmra.mrb[14].mxu0 %vm307_vm0, %v303_v13 }
 0x10a   : > { %v1974_v15 = vpop.f32.mrb[0].mxu0 }
 0x10b   : > { %v386_v16 = vpop.f32.mrb[1].mxu0 }
 0x10c   : > { %1982 = vmatprep.mubr.msk.f32.mxu1 %vm405_vm1, %v386_v16 }
 0x10d   : > { %1983 = vmatmul.mubr.msk.f32.vlgmr.msra.gmra.mrb[0].mxu1 %vm405_vm1, %v1974_v15  ;;  %v1769_v15 = vld [vmem:[%s3369_s1 + $0x38] sm:$0xff] }
 0x10e   : > { %v1977_v17 = vpop.f32.mrb[2].mxu0  ;;  %2049 = vmatpush3.bf16.msra.mxu1 %v2042_v7 }
 0x10f   : > { %v396_v18 = vpop.f32.mrb[3].mxu0  ;;  %2051 = vmatprep.subr.bf16.mxu1 %v2042_v7 }
 0x110   : > { %1985 = vmatprep.mubr.msk.f32.mxu1 %vm405_vm1, %v396_v18 }
 0x111   : > { %1986 = vmatmul.mubr.msk.f32.gmra.mrb[2].mxu1 %vm405_vm1, %v1977_v17 }
 0x112   : > { %v1992_v19 = vpop.f32.mrb[4].mxu0 }
 0x113   : > { %v571_v20 = vpop.f32.mrb[5].mxu0 }
 0x114   : > { %2000 = vmatprep.mubr.msk.f32.mxu1 %vm405_vm1, %v571_v20 }
 0x115   : > { %2001 = vmatmul.mubr.msk.f32.vlgmr.msra.gmra.mrb[4].mxu1 %vm405_vm1, %v1992_v19 }
 0x116   : > { %v1995_v21 = vpop.f32.mrb[6].mxu0  ;;  %2053 = vmatpush3.bf16.msra.mxu1 %v2042_v7 }
 0x117   : > { %v581_v22 = vpop.f32.mrb[7].mxu0  ;;  %2055 = vmatprep.subr.bf16.mxu1 %v2042_v7 }
 0x118   : > { %2003 = vmatprep.mubr.msk.f32.mxu1 %vm405_vm1, %v581_v22  ;;  %v1813_v22 = vld [vmem:[%s3369_s1 + $0x78] sm:$0xff] }
 0x119   : > { %2004 = vmatmul.mubr.msk.f32.gmra.mrb[6].mxu1 %vm405_vm1, %v1995_v21  ;;  %v1791_v21 = vld [vmem:[%s3369_s1 + $0x58] sm:$0xff] }
 0x11a   : > { %v2010_v23 = vpop.f32.mrb[8].mxu0 }
 0x11b   : > { %v755_v24 = vpop.f32.mrb[9].mxu0 }
 0x11c   : > { %2018 = vmatprep.mubr.msk.f32.mxu1 %vm405_vm1, %v755_v24 }
 0x11d   : > { %2019 = vmatmul.mubr.msk.f32.vlgmr.msra.gmra.mrb[8].mxu1 %vm405_vm1, %v2010_v23  ;;  %v1835_v23 = vld [vmem:[%s3369_s1 + $0x98] sm:$0xff] }
 0x11e   : > { %v2013_v25 = vpop.f32.mrb[10].mxu0  ;;  %2057 = vmatpush3.bf16.msra.mxu1 %v2042_v7 }
 0x11f   : > { %v765_v26 = vpop.f32.mrb[11].mxu0 }
 0x120   : > { %2021 = vmatprep.mubr.msk.f32.mxu1 %vm405_vm1, %v765_v26 }
 0x121   : > { %2022 = vmatmul.mubr.msk.f32.gmra.mrb[10].mxu1 %vm405_vm1, %v2013_v25 }
 0x122   : > { %v2028_v27 = vpop.f32.mrb[12].mxu0 }
 0x123   : > { %v939_v28 = vpop.f32.mrb[13].mxu0 }
 0x124   : > { %2036 = vmatprep.mubr.msk.f32.mxu1 %vm405_vm1, %v939_v28  ;;  %v1857_v28 = vld [vmem:[%s3369_s1 + $0xb8] sm:$0xff] }
 0x125   : > { %2037 = vmatmul.mubr.msk.f32.vlgmr.msra.gmra.mrb[12].mxu1 %vm405_vm1, %v2028_v27 }
 0x126   : > { %v2031_v29 = vpop.f32.mrb[14].mxu0 }
 0x127   : > { %v949_v30 = vpop.f32.mrb[15].mxu0 }
 0x128   : > { %2039 = vmatprep.mubr.msk.f32.mxu1 %vm405_vm1, %v949_v30  ;;  %v1901_v30 = vld [vmem:[%s3369_s1 + $0xf8] sm:$0xff] }
 0x129   : > { %2040 = vmatmul.mubr.msk.f32.gmra.mrb[14].mxu1 %vm405_vm1, %v2031_v29  ;;  %v1879_v29 = vld [vmem:[%s3369_s1 + $0xd8] sm:$0xff] }
 0x1e0   : > { %v1984_v44 = vpop.f32.mrb[0].mxu1 }
 0x1e1   : > { %v1060_v47 = vmul.f32 %v1984_v44, %v1056_v31  ;;  %v1124_v48 = vmul.f32 %v1984_v44, %v1767_v32  ;;  %v1189_v49 = vmul.f32 %v1984_v44, %v1789_v33  ;;  %v1254_v50 = vmul.f32 %v1984_v44, %v1811_v34  ;;  %v484_v52 = vpop.f32.mrb[1].mxu1 }
 0x1e2   : > { %v1319_v55 = vmul.f32 %v1984_v44, %v1833_v35  ;;  %v1384_v56 = vmul.f32 %v1984_v44, %v1855_v41  ;;  %v1449_v57 = vmul.f32 %v1984_v44, %v1877_v42  ;;  %v1514_v58 = vmul.f32 %v1984_v44, %v1899_v43 }
 0x1e3   : > { %v2466_v62 = vadd.f32 %v2404_v36, %v1060_v47  ;;  %v2469_v63 = vadd.f32 %v2409_v37, %v1124_v48  ;;  %v2472_v0 = vadd.f32 %v2414_v38, %v1189_v49  ;;  %v2475_v1 = vadd.f32 %v2419_v39, %v1254_v50  ;;  %v1057_v47 = vld [vmem:[%s3369_s1 + $0x10] sm:$0xff] }
 0x1e4   : > { %v2487_v5 = vadd.f32 %v2424_v40, %v1319_v55  ;;  %v2490_v6 = vadd.f32 %v2438_v45, %v1384_v56  ;;  %v2493_v7 = vadd.f32 %v2443_v46, %v1449_v57  ;;  %v2496_v8 = vadd.f32 %v2448_v51, %v1514_v58  ;;  %v1987_v9 = vpop.f32.mrb[2].mxu1  ;;  %v1768_v48 = vld [vmem:[%s3369_s1 + $0x30] sm:$0xff] }
 0x1e5   : > { %v1059_v10 = vmul.f32 %v1055_v53, %v484_v52  ;;  %v1123_v11 = vmul.f32 %v1766_v54, %v484_v52  ;;  %v1188_v12 = vmul.f32 %v1788_v59, %v484_v52  ;;  %v1253_v13 = vmul.f32 %v1810_v60, %v484_v52  ;;  %v494_v16 = vpop.f32.mrb[3].mxu1  ;;  %v1790_v55 = vld [vmem:[%s3369_s1 + $0x50] sm:$0xff] }
 0x1e6   : > { %v1318_v17 = vmul.f32 %v1832_v61, %v484_v52  ;;  %v1383_v18 = vmul.f32 %v1854_v2, %v484_v52  ;;  %v1448_v19 = vmul.f32 %v1876_v3, %v484_v52  ;;  %v1513_v20 = vmul.f32 %v1898_v4, %v484_v52  ;;  %v1812_v56 = vld [vmem:[%s3369_s1 + $0x70] sm:$0xff] }
 0x1e7   : > { %v2514_v24 = vadd.f32 %v2404_v36, %v1059_v10  ;;  %v2517_v25 = vadd.f32 %v2409_v37, %v1123_v11  ;;  %v2520_v26 = vadd.f32 %v2414_v38, %v1188_v12  ;;  %v2523_v27 = vadd.f32 %v2419_v39, %v1253_v13  ;;  %v1834_v57 = vld [vmem:[%s3369_s1 + $0x90] sm:$0xff] }
 0x1e8   : > { %v2535_v31 = vadd.f32 %v2424_v40, %v1318_v17  ;;  %v2538_v32 = vadd.f32 %v2438_v45, %v1383_v18  ;;  %v2541_v33 = vadd.f32 %v2443_v46, %v1448_v19  ;;  %v2544_v34 = vadd.f32 %v2448_v51, %v1513_v20  ;;  %v2546_v35 = vpop.f32.mrb[4].mxu1  ;;  %v1856_v2 = vld [vmem:[%s3369_s1 + $0xb0] sm:$0xff]  ;;  %v1755_v19 = vld [vmem:[%s3369_s1 + $0x108] sm:$0xff] }
 0x1e9   : > { %v1062_v41 = vmul.f32 %v1987_v9, %v1058_v14  ;;  %v1126_v42 = vmul.f32 %v1987_v9, %v1769_v15  ;;  %v1191_v43 = vmul.f32 %v1987_v9, %v1791_v21  ;;  %v1256_v44 = vmul.f32 %v1987_v9, %v1813_v22  ;;  %v2554_v49 = vpop.f32.mrb[5].mxu1  ;;  %v1878_v3 = vld [vmem:[%s3369_s1 + $0xd0] sm:$0xff]  ;;  %v1773_v20 = vld [vmem:[%s3369_s1 + $0x128] sm:$0xff] }
 0x1ea   : > { %v1321_v50 = vmul.f32 %v1987_v9, %v1835_v23  ;;  %v1386_v52 = vmul.f32 %v1987_v9, %v1857_v28  ;;  %v1451_v53 = vmul.f32 %v1987_v9, %v1879_v29  ;;  %v1516_v54 = vmul.f32 %v1987_v9, %v1901_v30  ;;  %v1900_v4 = vld [vmem:[%s3369_s1 + $0xf0] sm:$0xff]  ;;  %v1795_v30 = vld [vmem:[%s3369_s1 + $0x148] sm:$0xff] }
 0x1eb   : > { %v2566_v58 = vadd.f32 %v2404_v36, %v1062_v41  ;;  %v2569_v59 = vadd.f32 %v2409_v37, %v1126_v42  ;;  %v2572_v60 = vadd.f32 %v2414_v38, %v1191_v43  ;;  %v2575_v61 = vadd.f32 %v2419_v39, %v1256_v44  ;;  %v1817_v41 = vld [vmem:[%s3369_s1 + $0x168] sm:$0xff] }
 0x1ec   : > { %v2587_v9 = vadd.f32 %v2424_v40, %v1321_v50  ;;  %v2590_v10 = vadd.f32 %v2438_v45, %v1386_v52  ;;  %v2593_v11 = vadd.f32 %v2443_v46, %v1451_v53  ;;  %v2596_v12 = vadd.f32 %v2448_v51, %v1516_v54  ;;  %v2598_v13 = vpop.f32.mrb[6].mxu1  ;;  %v1839_v42 = vld [vmem:[%s3369_s1 + $0x188] sm:$0xff] }
 0x1ed   : > { %v1061_v14 = vmul.f32 %v1057_v47, %v494_v16  ;;  %v1125_v15 = vmul.f32 %v1768_v48, %v494_v16  ;;  %v1190_v17 = vmul.f32 %v1790_v55, %v494_v16  ;;  %v1255_v18 = vmul.f32 %v1812_v56, %v494_v16  ;;  %v2606_v21 = vpop.f32.mrb[7].mxu1  ;;  %v1861_v48 = vld [vmem:[%s3369_s1 + $0x1a8] sm:$0xff] }
 0x1ee   : > { %v1320_v22 = vmul.f32 %v1834_v57, %v494_v16  ;;  %v1385_v23 = vmul.f32 %v1856_v2, %v494_v16  ;;  %v1450_v28 = vmul.f32 %v1878_v3, %v494_v16  ;;  %v1515_v29 = vmul.f32 %v1900_v4, %v494_v16  ;;  %v1883_v50 = vld [vmem:[%s3369_s1 + $0x1c8] sm:$0xff] }
 0x1ef   : > { %v2618_v43 = vadd.f32 %v2404_v36, %v1061_v14  ;;  %v2621_v44 = vadd.f32 %v2409_v37, %v1125_v15  ;;  %v2624_v16 = vadd.f32 %v2414_v38, %v1190_v17  ;;  %v2627_v47 = vadd.f32 %v2419_v39, %v1255_v18  ;;  %v1905_v36 = vld [vmem:[%s3369_s1 + $0x1e8] sm:$0xff]  ;;  %v1794_v14 = vld [vmem:[%s3369_s1 + $0x140] sm:$0xff] }
 0x1f0   : > { %v2639_v37 = vadd.f32 %v2424_v40, %v1320_v22  ;;  %v2642_v38 = vadd.f32 %v2438_v45, %v1385_v23  ;;  %v2645_v39 = vadd.f32 %v2443_v46, %v1450_v28  ;;  %v2648_v52 = vadd.f32 %v2448_v51, %v1515_v29  ;;  %v2650_v53 = vpop.f32.mrb[8].mxu1  ;;  %v1754_v45 = vld [vmem:[%s3369_s1 + $0x100] sm:$0xff] }
 0x1f1   : > { %v1080_v54 = vmul.f32 %v2546_v35, %v1755_v19  ;;  %v1145_v55 = vmul.f32 %v2546_v35, %v1773_v20  ;;  %v1210_v56 = vmul.f32 %v2546_v35, %v1795_v30  ;;  %v1275_v40 = vmul.f32 %v2546_v35, %v1817_v41  ;;  %v1772_v46 = vld [vmem:[%s3369_s1 + $0x120] sm:$0xff]  ;;  %v2662_v51 = vpop.f32.mrb[9].mxu1 }
 0x1f2   : > { %3379 = vst [vmem:[#allocation8_spill] sm:$0xff] %v2645_v39  ;;  %3380 = vst [vmem:[#allocation9_spill] sm:$0xff] %v2648_v52  ;;  %v1340_v57 = vmul.f32 %v2546_v35, %v1839_v42  ;;  %v1405_v2 = vmul.f32 %v2546_v35, %v1861_v48  ;;  %v1470_v3 = vmul.f32 %v2546_v35, %v1883_v50  ;;  %v1816_v15 = vld [vmem:[%s3369_s1 + $0x160] sm:$0xff] }
 0x1f3   : > { %v1535_v4 = vmul.f32 %v2546_v35, %v1905_v36  ;;  %v1838_v17 = vld [vmem:[%s3369_s1 + $0x180] sm:$0xff]  ;;  %v2678_v18 = vadd.f32 %v1080_v54, %v2466_v62  ;;  %v2681_v19 = vadd.f32 %v1145_v55, %v2469_v63  ;;  %v2684_v35 = vadd.f32 %v1210_v56, %v2472_v0  ;;  %v1797_v55 = vld [vmem:[%s3369_s1 + $0x158] sm:$0xff] }
 0x1f4   : > { %v2687_v20 = vadd.f32 %v1275_v40, %v2475_v1  ;;  %v1860_v22 = vld [vmem:[%s3369_s1 + $0x1a0] sm:$0xff]  ;;  %v2699_v63 = vadd.f32 %v1340_v57, %v2487_v5  ;;  %v2702_v0 = vadd.f32 %v1405_v2, %v2490_v6  ;;  %v2705_v1 = vadd.f32 %v1470_v3, %v2493_v7  ;;  %v2710_v29 = vpop.f32.mrb[10].mxu1  ;;  %v1757_v6 = vld [vmem:[%s3369_s1 + $0x118] sm:$0xff] }
 0x1f5   : > { %v1882_v23 = vld [vmem:[%s3369_s1 + $0x1c0] sm:$0xff]  ;;  %v2708_v28 = vadd.f32 %v1535_v4, %v2496_v8  ;;  %v1079_v30 = vmul.f32 %v1754_v45, %v2554_v49  ;;  %v1144_v41 = vmul.f32 %v1772_v46, %v2554_v49  ;;  %v1209_v42 = vmul.f32 %v1794_v14, %v2554_v49  ;;  %v1775_v7 = vld [vmem:[%s3369_s1 + $0x138] sm:$0xff]  ;;  %v2722_v8 = vpop.f32.mrb[11].mxu1  ;;  %v1756_v14 = vld [vmem:[%s3369_s1 + $0x110] sm:$0xff] }
 0x1f6   : > { %v1904_v62 = vld [vmem:[%s3369_s1 + $0x1e0] sm:$0xff]  ;;  %v1274_v5 = vmul.f32 %v1816_v15, %v2554_v49  ;;  %v1339_v48 = vmul.f32 %v1838_v17, %v2554_v49  ;;  %v1404_v50 = vmul.f32 %v1860_v22, %v2554_v49  ;;  %v1469_v36 = vmul.f32 %v1882_v23, %v2554_v49  ;;  %v1819_v56 = vld [vmem:[%s3369_s1 + $0x178] sm:$0xff]  ;;  %v1818_v23 = vld [vmem:[%s3369_s1 + $0x170] sm:$0xff] }
 0x1f7   : > { %v1534_v54 = vmul.f32 %v1904_v62, %v2554_v49  ;;  %v1841_v40 = vld [vmem:[%s3369_s1 + $0x198] sm:$0xff]  ;;  %v2738_v45 = vadd.f32 %v1079_v30, %v2514_v24  ;;  %v2741_v46 = vadd.f32 %v1144_v41, %v2517_v25  ;;  %v2744_v49 = vadd.f32 %v1209_v42, %v2520_v26 }
 0x1f8   : > { %v2747_v57 = vadd.f32 %v1274_v5, %v2523_v27  ;;  %v1863_v2 = vld [vmem:[%s3369_s1 + $0x1b8] sm:$0xff]  ;;  %v2759_v25 = vadd.f32 %v1339_v48, %v2535_v31  ;;  %v2762_v26 = vadd.f32 %v1404_v50, %v2538_v32  ;;  %v2765_v27 = vadd.f32 %v1469_v36, %v2541_v33  ;;  %v2773_v15 = vpop.f32.mrb[12].mxu1  ;;  %v1774_v33 = vld [vmem:[%s3369_s1 + $0x130] sm:$0xff] }
 0x1f9   : > { %v1885_v3 = vld [vmem:[%s3369_s1 + $0x1d8] sm:$0xff]  ;;  %v2768_v4 = vadd.f32 %v1534_v54, %v2544_v34  ;;  %v1082_v17 = vmul.f32 %v2598_v13, %v1757_v6  ;;  %v1147_v31 = vmul.f32 %v2598_v13, %v1775_v7  ;;  %v1212_v22 = vmul.f32 %v2598_v13, %v1797_v55  ;;  %v1796_v34 = vld [vmem:[%s3369_s1 + $0x150] sm:$0xff]  ;;  %v2788_v62 = vpop.f32.mrb[13].mxu1 }
 0x1fa   : > { %v1907_v24 = vld [vmem:[%s3369_s1 + $0x1f8] sm:$0xff]  ;;  %v1277_v32 = vmul.f32 %v2598_v13, %v1819_v56  ;;  %v1342_v30 = vmul.f32 %v2598_v13, %v1841_v40  ;;  %v1407_v41 = vmul.f32 %v2598_v13, %v1863_v2  ;;  %v1472_v42 = vmul.f32 %v2598_v13, %v1885_v3  ;;  %v1840_v6 = vld [vmem:[%s3369_s1 + $0x190] sm:$0xff]  ;;  %v1759_v56 = vld [vmem:[%s3369_s1 + $0x208] sm:$0xff] }
 0x1fb   : > { %v1537_v5 = vmul.f32 %v2598_v13, %v1907_v24  ;;  %v1862_v7 = vld [vmem:[%s3369_s1 + $0x1b0] sm:$0xff]  ;;  %v2804_v50 = vadd.f32 %v1082_v17, %v2566_v58  ;;  %v2807_v36 = vadd.f32 %v1147_v31, %v2569_v59  ;;  %v2810_v13 = vadd.f32 %v1212_v22, %v2572_v60  ;;  %v1777_v58 = vld [vmem:[%s3369_s1 + $0x228] sm:$0xff] }
 0x1fc   : > { %v1884_v48 = vld [vmem:[%s3369_s1 + $0x1d0] sm:$0xff]  ;;  %v2813_v54 = vadd.f32 %v1277_v32, %v2575_v61  ;;  %v2825_v59 = vadd.f32 %v1342_v30, %v2587_v9  ;;  %v2828_v60 = vadd.f32 %v1407_v41, %v2590_v10  ;;  %v2831_v61 = vadd.f32 %v1472_v42, %v2593_v11  ;;  %v1799_v2 = vld [vmem:[%s3369_s1 + $0x248] sm:$0xff]  ;;  %v2845_v10 = vpop.f32.mrb[14].mxu1 }
 0x1fd   : > { %v1906_v55 = vld [vmem:[%s3369_s1 + $0x1f0] sm:$0xff]  ;;  %v2834_v40 = vadd.f32 %v1537_v5, %v2596_v12  ;;  %v1821_v3 = vld [vmem:[%s3369_s1 + $0x268] sm:$0xff]  ;;  %v2848_v11 = vmul.f32 %v1756_v14, %v2606_v21  ;;  %v2851_v12 = vmul.f32 %v1774_v33, %v2606_v21  ;;  %v2854_v24 = vmul.f32 %v1796_v34, %v2606_v21  ;;  %v2868_v32 = vpop.f32.mrb[15].mxu1 }
 0x1fe   : > { %v1843_v9 = vld [vmem:[%s3369_s1 + $0x288] sm:$0xff]  ;;  %v2857_v17 = vmul.f32 %v1818_v23, %v2606_v21  ;;  %v2871_v33 = vmul.f32 %v1840_v6, %v2606_v21  ;;  %v2874_v34 = vmul.f32 %v1862_v7, %v2606_v21  ;;  %v2877_v23 = vmul.f32 %v1884_v48, %v2606_v21  ;;  %v1758_v6 = vld [vmem:[%s3369_s1 + $0x200] sm:$0xff] }
 0x1ff   : > { %v1865_v31 = vld [vmem:[%s3369_s1 + $0x2a8] sm:$0xff]  ;;  %v2880_v30 = vmul.f32 %v1906_v55, %v2606_v21  ;;  %v1093_v41 = vmul.f32 %v2650_v53, %v1759_v56  ;;  %v1158_v42 = vmul.f32 %v2650_v53, %v1777_v58  ;;  %v1223_v5 = vmul.f32 %v2650_v53, %v1799_v2  ;;  %v1776_v7 = vld [vmem:[%s3369_s1 + $0x220] sm:$0xff] }
 0x200   : > { %v1887_v22 = vld [vmem:[%s3369_s1 + $0x2c8] sm:$0xff]  ;;  %3381 = vst [vmem:[#allocation10_spill] sm:$0xff] %v2874_v34  ;;  %3382 = vst [vmem:[#allocation11_spill] sm:$0xff] %v2877_v23  ;;  %v1288_v52 = vmul.f32 %v2650_v53, %v1821_v3  ;;  %v1353_v48 = vmul.f32 %v2650_v53, %v1843_v9  ;;  %v1418_v21 = vmul.f32 %v2650_v53, %v1865_v31  ;;  %v1798_v58 = vld [vmem:[%s3369_s1 + $0x240] sm:$0xff] }
 0x201   : > { %v1909_v14 = vld [vmem:[%s3369_s1 + $0x2e8] sm:$0xff]  ;;  %3383 = vst [vmem:[#allocation12_spill] sm:$0xff] %v2880_v30  ;;  %v1483_v55 = vmul.f32 %v2650_v53, %v1887_v22  ;;  %v1820_v2 = vld [vmem:[%s3369_s1 + $0x260] sm:$0xff]  ;;  %v2906_v9 = vadd.f32 %v1093_v41, %v2678_v18  ;;  %v2909_v31 = vadd.f32 %v1158_v42, %v2681_v19  ;;  %v1092_v41 = vmul.f32 %v1758_v6, %v2662_v51 }
 0x202   : > { %v1548_v56 = vmul.f32 %v2650_v53, %v1909_v14  ;;  %v1842_v3 = vld [vmem:[%s3369_s1 + $0x280] sm:$0xff]  ;;  %v2912_v53 = vadd.f32 %v1223_v5, %v2684_v35  ;;  %v2915_v22 = vadd.f32 %v1288_v52, %v2687_v20  ;;  %v2927_v19 = vadd.f32 %v1353_v48, %v2699_v63  ;;  %v1761_v63 = vld [vmem:[%s3369_s1 + $0x218] sm:$0xff] }
 0x203   : > { %v1864_v14 = vld [vmem:[%s3369_s1 + $0x2a0] sm:$0xff]  ;;  %v2930_v35 = vadd.f32 %v1418_v21, %v2702_v0  ;;  %v2933_v52 = vadd.f32 %v1483_v55, %v2705_v1  ;;  %v1157_v42 = vmul.f32 %v1776_v7, %v2662_v51  ;;  %v1222_v5 = vmul.f32 %v1798_v58, %v2662_v51  ;;  %v1779_v0 = vld [vmem:[%s3369_s1 + $0x238] sm:$0xff] }
 0x204   : > { %v1886_v30 = vld [vmem:[%s3369_s1 + $0x2c0] sm:$0xff]  ;;  %v2936_v20 = vadd.f32 %v1548_v56, %v2708_v28  ;;  %v1287_v23 = vmul.f32 %v1820_v2, %v2662_v51  ;;  %v1352_v1 = vmul.f32 %v1842_v3, %v2662_v51  ;;  %v1417_v28 = vmul.f32 %v1864_v14, %v2662_v51  ;;  %v1801_v48 = vld [vmem:[%s3369_s1 + $0x258] sm:$0xff]  ;;  %v1760_v14 = vld [vmem:[%s3369_s1 + $0x210] sm:$0xff] }
 0x205   : > { %v1908_v18 = vld [vmem:[%s3369_s1 + $0x2e0] sm:$0xff]  ;;  %v1482_v6 = vmul.f32 %v1886_v30, %v2662_v51  ;;  %v1823_v21 = vld [vmem:[%s3369_s1 + $0x278] sm:$0xff]  ;;  %v2962_v56 = vadd.f32 %v1092_v41, %v2738_v45  ;;  %v2965_v58 = vadd.f32 %v1157_v42, %v2741_v46  ;;  %v1160_v41 = vmul.f32 %v2710_v29, %v1779_v0  ;;  %v1822_v42 = vld [vmem:[%s3369_s1 + $0x270] sm:$0xff] }
 0x206   : > { %v1547_v7 = vmul.f32 %v1908_v18, %v2662_v51  ;;  %v1845_v55 = vld [vmem:[%s3369_s1 + $0x298] sm:$0xff]  ;;  %v2968_v51 = vadd.f32 %v1222_v5, %v2744_v49  ;;  %v2971_v30 = vadd.f32 %v1287_v23, %v2747_v57  ;;  %v2983_v46 = vadd.f32 %v1352_v1, %v2759_v25 }
 0x207   : > { %v1867_v2 = vld [vmem:[%s3369_s1 + $0x2b8] sm:$0xff]  ;;  %v2986_v49 = vadd.f32 %v1417_v28, %v2762_v26  ;;  %v2989_v57 = vadd.f32 %v1482_v6, %v2765_v27  ;;  %v1095_v18 = vmul.f32 %v2710_v29, %v1761_v63  ;;  %v1225_v25 = vmul.f32 %v2710_v29, %v1801_v48  ;;  %v1778_v27 = vld [vmem:[%s3369_s1 + $0x230] sm:$0xff] }
 0x208   : > { %v1889_v3 = vld [vmem:[%s3369_s1 + $0x2d8] sm:$0xff]  ;;  %v2992_v23 = vadd.f32 %v1547_v7, %v2768_v4  ;;  %v1290_v26 = vmul.f32 %v2710_v29, %v1823_v21  ;;  %v1800_v4 = vld [vmem:[%s3369_s1 + $0x250] sm:$0xff]  ;;  %v1355_v5 = vmul.f32 %v2710_v29, %v1845_v55  ;;  %v1420_v63 = vmul.f32 %v2710_v29, %v1867_v2 }
 0x209   : > { %v1911_v45 = vld [vmem:[%s3369_s1 + $0x2f8] sm:$0xff]  ;;  %v1485_v0 = vmul.f32 %v2710_v29, %v1889_v3  ;;  %v1844_v28 = vld [vmem:[%s3369_s1 + $0x290] sm:$0xff]  ;;  %v3024_v48 = vadd.f32 %v1095_v18, %v2804_v50  ;;  %v3027_v21 = vadd.f32 %v1160_v41, %v2807_v36  ;;  %v1763_v3 = vld [vmem:[%s3369_s1 + $0x308] sm:$0xff] }
 0x20a   : > { %v1550_v1 = vmul.f32 %v2710_v29, %v1911_v45  ;;  %v1866_v6 = vld [vmem:[%s3369_s1 + $0x2b0] sm:$0xff]  ;;  %v3030_v29 = vadd.f32 %v1225_v25, %v2810_v13  ;;  %v3033_v55 = vadd.f32 %v1290_v26, %v2813_v54  ;;  %v1781_v50 = vld [vmem:[%s3369_s1 + $0x328] sm:$0xff]  ;;  %v3045_v36 = vadd.f32 %v1355_v5, %v2825_v59 }
 0x20b   : > { %v1888_v7 = vld [vmem:[%s3369_s1 + $0x2d0] sm:$0xff]  ;;  %v3048_v13 = vadd.f32 %v1420_v63, %v2828_v60  ;;  %v3051_v54 = vadd.f32 %v1485_v0, %v2831_v61  ;;  %v1803_v18 = vld [vmem:[%s3369_s1 + $0x348] sm:$0xff]  ;;  %v3067_v60 = vmul.f32 %v1760_v14, %v2722_v8  ;;  %v3070_v61 = vmul.f32 %v1778_v27, %v2722_v8 }
 0x20c   : > { %v1910_v2 = vld [vmem:[%s3369_s1 + $0x2f0] sm:$0xff]  ;;  %v3054_v45 = vadd.f32 %v1550_v1, %v2834_v40  ;;  %v1825_v41 = vld [vmem:[%s3369_s1 + $0x368] sm:$0xff]  ;;  %v3073_v40 = vmul.f32 %v1800_v4, %v2722_v8  ;;  %v3076_v25 = vmul.f32 %v1822_v42, %v2722_v8  ;;  %v3088_v27 = vmul.f32 %v1844_v28, %v2722_v8  ;;  %v1762_v28 = vld [vmem:[%s3369_s1 + $0x300] sm:$0xff] }
 0x20d   : > { %v1847_v59 = vld [vmem:[%s3369_s1 + $0x388] sm:$0xff]  ;;  %v3091_v4 = vmul.f32 %v1866_v6, %v2722_v8  ;;  %v3094_v42 = vmul.f32 %v1888_v7, %v2722_v8  ;;  %v3097_v63 = vmul.f32 %v1910_v2, %v2722_v8  ;;  %v1106_v0 = vmul.f32 %v2773_v15, %v1763_v3  ;;  %v1780_v6 = vld [vmem:[%s3369_s1 + $0x320] sm:$0xff] }
 0x20e   : > { %v1869_v26 = vld [vmem:[%s3369_s1 + $0x3a8] sm:$0xff]  ;;  %v1171_v1 = vmul.f32 %v2773_v15, %v1781_v50  ;;  %v1236_v39 = vmul.f32 %v2773_v15, %v1803_v18  ;;  %v1301_v34 = vmul.f32 %v2773_v15, %v1825_v41  ;;  %v1366_v7 = vmul.f32 %v2773_v15, %v1847_v59  ;;  %v1802_v50 = vld [vmem:[%s3369_s1 + $0x340] sm:$0xff] }
 0x20f   : > { %v1891_v5 = vld [vmem:[%s3369_s1 + $0x3c8] sm:$0xff]  ;;  %3384 = vst [vmem:[#allocation13_spill] sm:$0xff] %v3094_v42  ;;  %3385 = vst [vmem:[#allocation14_spill] sm:$0xff] %v3097_v63  ;;  %v1431_v8 = vmul.f32 %v2773_v15, %v1869_v26  ;;  %v1824_v18 = vld [vmem:[%s3369_s1 + $0x360] sm:$0xff]  ;;  %v1110_v59 = vadd.f32 %v1106_v0, %v2906_v9 }
 0x210   : > { %v1913_v14 = vld [vmem:[%s3369_s1 + $0x3e8] sm:$0xff]  ;;  %v1496_v2 = vmul.f32 %v2773_v15, %v1891_v5  ;;  %v1846_v41 = vld [vmem:[%s3369_s1 + $0x380] sm:$0xff]  ;;  %v1175_v26 = vadd.f32 %v1171_v1, %v2909_v31  ;;  %v1240_v5 = vadd.f32 %v1236_v39, %v2912_v53  ;;  %v1370_v9 = vadd.f32 %v1366_v7, %v2927_v19  ;;  %v1805_v7 = vld [vmem:[%s3369_s1 + $0x358] sm:$0xff] }
 0x211   : > { %v1561_v3 = vmul.f32 %v2773_v15, %v1913_v14  ;;  %v1305_v15 = vadd.f32 %v1301_v34, %v2915_v22  ;;  %v1868_v14 = vld [vmem:[%s3369_s1 + $0x3a0] sm:$0xff]  ;;  %v1435_v31 = vadd.f32 %v1431_v8, %v2930_v35  ;;  %1115 = vst.msk [vmem:[%s3141_s17 + $0x8] sm:$0xff] %vm1113_vm2, %v1110_v59  ;;  %v1105_v53 = vmul.f32 %v1762_v28, %v2788_v62  ;;  %v1827_v8 = vld [vmem:[%s3369_s1 + $0x378] sm:$0xff] }
 0x212   : > { %v1890_v63 = vld [vmem:[%s3369_s1 + $0x3c0] sm:$0xff]  ;;  %v1500_v39 = vadd.f32 %v1496_v2, %v2933_v52  ;;  %1785 = vst.msk [vmem:[%s3141_s17 + $0x28] sm:$0xff] %vm1113_vm2, %v1175_v26  ;;  %1807 = vst.msk [vmem:[%s3141_s17 + $0x48] sm:$0xff] %vm1113_vm2, %v1240_v5  ;;  %v1170_v22 = vmul.f32 %v1780_v6, %v2788_v62  ;;  %v1235_v19 = vmul.f32 %v1802_v50, %v2788_v62  ;;  %v1765_v52 = vld [vmem:[%s3369_s1 + $0x318] sm:$0xff] }
 0x213   : > { %v1912_v42 = vld [vmem:[%s3369_s1 + $0x3e0] sm:$0xff]  ;;  %v1565_v34 = vadd.f32 %v1561_v3, %v2936_v20  ;;  %1829 = vst.msk [vmem:[%s3141_s17 + $0x68] sm:$0xff] %vm1113_vm2, %v1305_v15  ;;  %v1300_v35 = vmul.f32 %v1824_v18, %v2788_v62  ;;  %v1783_v20 = vld [vmem:[%s3369_s1 + $0x338] sm:$0xff]  ;;  %1851 = vst.msk [vmem:[%s3141_s17 + $0x88] sm:$0xff] %vm1113_vm2, %v1370_v9  ;;  %v1365_v0 = vmul.f32 %v1846_v41, %v2788_v62 }
 0x214   : > { %1873 = vst.msk [vmem:[%s3141_s17 + $0xa8] sm:$0xff] %vm1113_vm2, %v1435_v31  ;;  %1895 = vst.msk [vmem:[%s3141_s17 + $0xc8] sm:$0xff] %vm1113_vm2, %v1500_v39  ;;  %v1430_v1 = vmul.f32 %v1868_v14, %v2788_v62  ;;  %v1495_v28 = vmul.f32 %v1890_v63, %v2788_v62  ;;  %v1560_v6 = vmul.f32 %v1912_v42, %v2788_v62  ;;  %v1849_v2 = vld [vmem:[%s3369_s1 + $0x398] sm:$0xff]  ;;  %v1764_v14 = vld [vmem:[%s3369_s1 + $0x310] sm:$0xff] }
 0x215   : > { %1917 = vst.msk [vmem:[%s3141_s17 + $0xe8] sm:$0xff] %vm1113_vm2, %v1565_v34  ;;  %v1109_v63 = vadd.f32 %v1105_v53, %v2962_v56  ;;  %v1174_v3 = vadd.f32 %v1170_v22, %v2965_v58  ;;  %v1239_v62 = vadd.f32 %v1235_v19, %v2968_v51  ;;  %v1304_v42 = vadd.f32 %v1300_v35, %v2971_v30  ;;  %v1871_v50 = vld [vmem:[%s3369_s1 + $0x3b8] sm:$0xff]  ;;  %v1782_v9 = vld [vmem:[%s3369_s1 + $0x330] sm:$0xff] }
 0x216   : > { %v1893_v18 = vld [vmem:[%s3369_s1 + $0x3d8] sm:$0xff]  ;;  %v1369_v58 = vadd.f32 %v1365_v0, %v2983_v46  ;;  %v1434_v51 = vadd.f32 %v1430_v1, %v2986_v49  ;;  %v1499_v30 = vadd.f32 %v1495_v28, %v2989_v57  ;;  %v1564_v41 = vadd.f32 %v1560_v6, %v2992_v23  ;;  %v1826_v22 = vld [vmem:[%s3369_s1 + $0x370] sm:$0xff] }
 0x217   : > { %v1915_v56 = vld [vmem:[%s3369_s1 + $0x3f8] sm:$0xff]  ;;  %1114 = vst.msk [vmem:[%s3141_s17] sm:$0xff] %vm1113_vm2, %v1109_v63  ;;  %1784 = vst.msk [vmem:[%s3141_s17 + $0x20] sm:$0xff] %vm1113_vm2, %v1174_v3  ;;  %v1108_v59 = vmul.f32 %v2845_v10, %v1765_v52  ;;  %v1173_v26 = vmul.f32 %v2845_v10, %v1783_v20  ;;  %v1238_v46 = vmul.f32 %v2845_v10, %v1805_v7  ;;  %v1870_v35 = vld [vmem:[%s3369_s1 + $0x3b0] sm:$0xff] }
 0x218   : > { %1806 = vst.msk [vmem:[%s3141_s17 + $0x40] sm:$0xff] %vm1113_vm2, %v1239_v62  ;;  %1828 = vst.msk [vmem:[%s3141_s17 + $0x60] sm:$0xff] %vm1113_vm2, %v1304_v42  ;;  %v1303_v49 = vmul.f32 %v2845_v10, %v1827_v8  ;;  %v1368_v57 = vmul.f32 %v2845_v10, %v1849_v2  ;;  %v1433_v23 = vmul.f32 %v2845_v10, %v1871_v50  ;;  %v3387_v7 = vld [vmem:[#allocation8_spill] sm:$0xff]  ;;  %v3389_v62 = vld [vmem:[#allocation13_spill] sm:$0xff] }
 0x219   : > { %1850 = vst.msk [vmem:[%s3141_s17 + $0x80] sm:$0xff] %vm1113_vm2, %v1369_v58  ;;  %1872 = vst.msk [vmem:[%s3141_s17 + $0xa0] sm:$0xff] %vm1113_vm2, %v1434_v51  ;;  %v1498_v5 = vmul.f32 %v2845_v10, %v1893_v18  ;;  %v1563_v15 = vmul.f32 %v2845_v10, %v1915_v56  ;;  %v1112_v31 = vadd.f32 %v1108_v59, %v3024_v48  ;;  %v1804_v10 = vld [vmem:[%s3369_s1 + $0x350] sm:$0xff]  ;;  %v3390_v42 = vld [vmem:[#allocation9_spill] sm:$0xff] }
 0x21a   : > { %1894 = vst.msk [vmem:[%s3141_s17 + $0xc0] sm:$0xff] %vm1113_vm2, %v1499_v30  ;;  %1916 = vst.msk [vmem:[%s3141_s17 + $0xe0] sm:$0xff] %vm1113_vm2, %v1564_v41  ;;  %v1177_v39 = vadd.f32 %v1173_v26, %v3027_v21  ;;  %v1242_v34 = vadd.f32 %v1238_v46, %v3030_v29  ;;  %v1307_v53 = vadd.f32 %v1303_v49, %v3033_v55  ;;  %v1848_v55 = vld [vmem:[%s3369_s1 + $0x390] sm:$0xff]  ;;  %v3391_v50 = vld [vmem:[#allocation12_spill] sm:$0xff] }
 0x21b   : > { %v1372_v19 = vadd.f32 %v1368_v57, %v3045_v36  ;;  %v1437_v48 = vadd.f32 %v1433_v23, %v3048_v13  ;;  %v1502_v21 = vadd.f32 %v1498_v5, %v3051_v54  ;;  %v1567_v29 = vadd.f32 %v1563_v15, %v3054_v45  ;;  %1117 = vst.msk [vmem:[%s3141_s17 + $0x18] sm:$0xff] %vm1113_vm2, %v1112_v31  ;;  %v3392_v51 = vld [vmem:[#allocation14_spill] sm:$0xff] }
 0x21c   : > { %1787 = vst.msk [vmem:[%s3141_s17 + $0x38] sm:$0xff] %vm1113_vm2, %v1177_v39  ;;  %1809 = vst.msk [vmem:[%s3141_s17 + $0x58] sm:$0xff] %vm1113_vm2, %v1242_v34  ;;  %v1085_v36 = vadd.f32 %v2848_v11, %v2618_v43  ;;  %v1107_v13 = vmul.f32 %v1764_v14, %v2868_v32  ;;  %v1150_v54 = vadd.f32 %v2851_v12, %v2621_v44 }
 0x21d   : > { %1831 = vst.msk [vmem:[%s3141_s17 + $0x78] sm:$0xff] %vm1113_vm2, %v1307_v53  ;;  %v1172_v45 = vmul.f32 %v1782_v9, %v2868_v32  ;;  %1853 = vst.msk [vmem:[%s3141_s17 + $0x98] sm:$0xff] %vm1113_vm2, %v1372_v19  ;;  %v1215_v43 = vadd.f32 %v2854_v24, %v2624_v16  ;;  %v1237_v11 = vmul.f32 %v1804_v10, %v2868_v32  ;;  %v1892_v16 = vld [vmem:[%s3369_s1 + $0x3d0] sm:$0xff] }
 0x21e   : > { %1875 = vst.msk [vmem:[%s3141_s17 + $0xb8] sm:$0xff] %vm1113_vm2, %v1437_v48  ;;  %1897 = vst.msk [vmem:[%s3141_s17 + $0xd8] sm:$0xff] %vm1113_vm2, %v1502_v21  ;;  %v1280_v44 = vadd.f32 %v2857_v17, %v2627_v47  ;;  %v1302_v12 = vmul.f32 %v1826_v22, %v2868_v32  ;;  %v1098_v52 = vadd.f32 %v3067_v60, %v1085_v36  ;;  %v3386_v17 = vld [vmem:[#allocation10_spill] sm:$0xff] }
 0x21f   : > { %1919 = vst.msk [vmem:[%s3141_s17 + $0xf8] sm:$0xff] %vm1113_vm2, %v1567_v29  ;;  %v1163_v20 = vadd.f32 %v3070_v61, %v1150_v54  ;;  %v1345_v0 = vadd.f32 %v2871_v33, %v2639_v37  ;;  %v1367_v1 = vmul.f32 %v1848_v55, %v2868_v32  ;;  %v1228_v24 = vadd.f32 %v3073_v40, %v1215_v43  ;;  %v1914_v37 = vld [vmem:[%s3369_s1 + $0x3f0] sm:$0xff]  ;;  %v3388_v40 = vld [vmem:[#allocation11_spill] sm:$0xff] }
 0x220   : > { %v1293_v47 = vadd.f32 %v3076_v25, %v1280_v44  ;;  %v1410_v60 = vadd.f32 %v3386_v17, %v2642_v38  ;;  %v1432_v61 = vmul.f32 %v1870_v35, %v2868_v32  ;;  %v1111_v33 = vadd.f32 %v1107_v13, %v1098_v52 }
 0x221   : > { %v1176_v28 = vadd.f32 %v1172_v45, %v1163_v20  ;;  %v1358_v6 = vadd.f32 %v3088_v27, %v1345_v0  ;;  %v1475_v8 = vadd.f32 %v3388_v40, %v3387_v7  ;;  %v1241_v25 = vadd.f32 %v1237_v11, %v1228_v24 }
 0x222   : > { %v1306_v2 = vadd.f32 %v1302_v12, %v1293_v47  ;;  %v1423_v38 = vadd.f32 %v3091_v4, %v1410_v60  ;;  %v1497_v63 = vmul.f32 %v1892_v16, %v2868_v32  ;;  %1116 = vst.msk [vmem:[%s3141_s17 + $0x10] sm:$0xff] %vm1113_vm2, %v1111_v33  ;;  %v1540_v18 = vadd.f32 %v3391_v50, %v3390_v42 }
 0x223   : > { %1786 = vst.msk [vmem:[%s3141_s17 + $0x30] sm:$0xff] %vm1113_vm2, %v1176_v28  ;;  %v1371_v3 = vadd.f32 %v1367_v1, %v1358_v6  ;;  %v1488_v27 = vadd.f32 %v3389_v62, %v1475_v8  ;;  %v1562_v56 = vmul.f32 %v1914_v37, %v2868_v32  ;;  %1808 = vst.msk [vmem:[%s3141_s17 + $0x50] sm:$0xff] %vm1113_vm2, %v1241_v25 }
 0x224   : > { %1830 = vst.msk [vmem:[%s3141_s17 + $0x70] sm:$0xff] %vm1113_vm2, %v1306_v2  ;;  %v1436_v4 = vadd.f32 %v1432_v61, %v1423_v38  ;;  %v1553_v30 = vadd.f32 %v3392_v51, %v1540_v18 }
 0x225   : > { %1852 = vst.msk [vmem:[%s3141_s17 + $0x90] sm:$0xff] %vm1113_vm2, %v1371_v3  ;;  %v1501_v58 = vadd.f32 %v1497_v63, %v1488_v27 }
 0x226   : > { %1874 = vst.msk [vmem:[%s3141_s17 + $0xb0] sm:$0xff] %vm1113_vm2, %v1436_v4  ;;  %v1566_v41 = vadd.f32 %v1562_v56, %v1553_v30 }
 0x227   : > { %1896 = vst.msk [vmem:[%s3141_s17 + $0xd0] sm:$0xff] %vm1113_vm2, %v1501_v58 }
 0x228   : > { %1918 = vst.msk [vmem:[%s3141_s17 + $0xf0] sm:$0xff] %vm1113_vm2, %v1566_v41 }
 0x229   : > { %s1921_s16 = sshll.u32 %s2192_s21, 2  ;;  %s1922_s26 = sshll.u32 %s2196_s22, 6 }
 0x22a   : > { %s1587_s27 = sadd.s32 %s1922_s26, %s1921_s16  ;;  %s1606_s30 = sshll.u32 %s3141_s17, 4  ;;  %s1607_s30 = int_to_ptr.vmem [resolvable:$true] %s1606_s30 }
 0x22b   : > { %s1923_s9 = sshll.u32 %s1587_s27, 7  ;;  %s2210_s11 = smov 512  }
 0x22c   : > { %s1589_s6 = scalar_lea.hbm %s3373_s5, %s1923_s9  ;;  %2058 = sst [smem:[#allocation6]] (%p2307_p8), %s2210_s11 }
 0x22d   : > { %s2211_s13 = smov 1024   ;;  %s2212_s14 = smov 4  }
 0x22e   : > { %2059 = sst [smem:[#allocation6 + $0x1]] (%p2307_p8), %s2211_s13  ;;  %s2213_s21 = smov 128  }
 0x22f   : > { %2060 = sst [smem:[#allocation6 + $0x2]] (%p2307_p8), %s2212_s14  ;;  %s2214_s22 = smov 8  }
 0x230   : > { %2061 = sst [smem:[#allocation6 + $0x3]] (%p2307_p8), %s2213_s21  ;;  %s2215_s17 = smov [#allocation5]  }
 0x231   : > { %2062 = sst [smem:[#allocation6 + $0x4]] (%p2307_p8), %s2213_s21  ;;  %s2216_s16 = smov 0  }
 0x232   : > { %2063 = sst [smem:[#allocation6 + $0x5]] (%p2307_p8), %s2214_s22 }
 0x233   : > { %2064 = dma.general (%p2307_p8), %s1607_s30, 4096, %s1589_s6, %s1574_s15, %s2215_s17, [#allocation6], %s2216_s16, 0  }
 0x234 PF: > { %p2070_p1 = scmp.ge.s32.totalorder %s2208_s25, 2  ;;  %s1634_s26 = sand.u32 1, %s2180_s18  }
 0x235   : > { %s1635_s27 = scalar_lea.sflag [#allocation4], %s1634_s26 }
 0x236   : > { %p2067_p2 = pnand %p2070_p1, %p2311_p9 }
 0x238   : > { %2175 = dma.done.wait (!%p2067_p2), %s1635_s27, 4096  }
 0x239   : > { %2177 = vsyncadd (!%p2067_p2), %s1635_s27, 4294963200  ;;  %s18_s25 = sadd.s32 1, %s2208_s25   ;;  %s3393_s18 = smov %s2184_s19 }
 0x23a   : > { %p15_p3 = scmp.ge.s32.totalorder %s18_s25, 6   ;;  %s3394_s19 = smov %s2188_s20 }
 0x23b   : > { %s3395_s20 = smov %s2319_s12  ;;  %s3396_s21 = smov %s2200_s23 }
 0x23c   : > { %s3397_s22 = smov %s2204_s24  ;;  %s3398_s23 = smov %s3401_s28 }
 0x23d   : > { %s3399_s24 = smov %s3405_s29  ;;  %17 = sbr.rel (!%p15_p3) target bundleno = 7 (0x7), region = 171 }
 0x244   :  { %1640 = vsyncpa [#allocation4], 1 }
 0x245   :  { %1642 = vsyncpa [#allocation4 + $0x1], 1 }

</bundles_post_ra>
